<compile_context>
chip_gen: v6e
topology: v6e:2x2x1
jax: 0.10.0
libtpu: 0.0.40
codegen_flags: <defaults>
</compile_context>

<pallas_src>
import functools

import jax
import jax.numpy as jnp
from jax.experimental import pallas as pl
from jax.experimental.pallas import tpu as pltpu

EPS = 1e-5


# ----------------------------- helpers --------------------------------------

def _round_up(x, m):
    return (x + m - 1) // m * m


_TPU_VMEM_CAP = None


def _tpu_vmem_capacity():
    """Physical VMEM bytes per core; conservative 64 MiB (v7x) fallback."""
    global _TPU_VMEM_CAP
    if _TPU_VMEM_CAP is None:
        try:
            _TPU_VMEM_CAP = int(pltpu.get_tpu_info().vmem_capacity_bytes)
        except Exception:
            _TPU_VMEM_CAP = 64 * 1024 * 1024
    return _TPU_VMEM_CAP


def _conv_tiling(k, esize, m128):
    """(block_m, vmem_limit) per TPU generation.

    v5e/v6e (128 MiB): block_m up to 4096, ~77 MiB scoped limit.
    v7x (64 MiB): ~38 MiB limit; block_m capped so the double-buffered
    (4, K, bm) patch block still fits.
    """
    cap = _tpu_vmem_capacity()
    vmem_limit = min(int(cap * 0.6), 96 * 1024 * 1024)
    p_budget = vmem_limit // 2                 # double-buffered patch blocks
    bm = p_budget // (2 * 4 * k * esize)
    bm = max(512, min(4096, (bm // 128) * 128))
    bm = min(bm, m128)
    return bm, vmem_limit


# ----------------------------- Pallas kernels -------------------------------

def _conv_pool_relu_kernel(p_ref, w_ref, b_ref, z_ref, stat_ref, *,
                           m_valid, need_mask):
    """Fused conv(as matmul) + 2x2 maxpool + ReLU + BN partial statistics.

    p_ref : (4, K, bm)  the 4 pool-window candidates of im2col patches
                        (K = (cin, kh, kw), lane axis = bm output positions).
    w_ref : (Cout, K)   flattened conv weight (torch (out, in, kh, kw) order).
    b_ref : (Cout, 1)   conv bias (f32).
    z_ref : (Cout, bm)  pooled + ReLU'd activations (lane-dense f32).
    stat_ref : (1, Cout, 2)  per-tile BN partial [sum, sum-of-squares].
    """
    w = w_ref[...]
    y0 = jnp.dot(w, p_ref[0], preferred_element_type=jnp.float32)
    y1 = jnp.dot(w, p_ref[1], preferred_element_type=jnp.float32)
    y2 = jnp.dot(w, p_ref[2], preferred_element_type=jnp.float32)
    y3 = jnp.dot(w, p_ref[3], preferred_element_type=jnp.float32)
    # bias is shared by the 4 candidates -> add after the max
    m = jnp.maximum(jnp.maximum(y0, y1), jnp.maximum(y2, y3)) + b_ref[...]
    m = jnp.maximum(m, 0.0)                            # ReLU
    z_ref[...] = m.astype(z_ref.dtype)
    if need_mask:                                      # exclude padded columns
        bm = m.shape[1]
        col = (jax.lax.broadcasted_iota(jnp.int32, (1, bm), 1)
               + pl.program_id(0) * bm)
        m = jnp.where(col < m_valid, m, 0.0)
    s = jnp.sum(m, axis=1, keepdims=True)
    ss = jnp.sum(m * m, axis=1, keepdims=True)
    stat_ref[0] = jnp.concatenate([s, ss], axis=1)     # one merged stat block


def _mlp_head_kernel(x_ref, w1_ref, b1_ref, w2_ref, b2_ref, o_ref):
    """Fused fc1 + ReLU + fc2 + log_softmax over a tile of batch rows."""
    h = jnp.dot(x_ref[...], w1_ref[...],
                preferred_element_type=jnp.float32) + b1_ref[...]
    h = jnp.maximum(h, 0.0)
    logits = jnp.dot(h, w2_ref[...],
                     preferred_element_type=jnp.float32) + b2_ref[...]
    mx = jnp.max(logits, axis=1, keepdims=True)
    s = logits - mx
    lse = jnp.log(jnp.sum(jnp.exp(s), axis=1, keepdims=True))
    o_ref[...] = (s - lse).astype(o_ref.dtype)


# ----------------------------- Pallas wrappers ------------------------------

def conv_pool_relu_bnstats(p4, w, b):
    """p4: (4, K, M) patches, w: (Cout, K), b: (Cout, 1).

    Returns (z (Cout, M) f32, bn_sum (Cout,), bn_sumsq (Cout,)).
    """
    _, k, m = p4.shape
    c_out = w.shape[0]
    m128 = _round_up(m, 128)
    bm, vmem_limit = _conv_tiling(k, p4.dtype.itemsize, m128)
    g = _round_up(m128, bm) // bm
    m_pad = g * bm
    if m_pad != m:
        p4 = jnp.pad(p4, ((0, 0), (0, 0), (0, m_pad - m)))

    kernel = functools.partial(_conv_pool_relu_kernel,
                               m_valid=m, need_mask=(m_pad != m))
    grid_spec = pltpu.PrefetchScalarGridSpec(
        num_scalar_prefetch=0,
        grid=(g,),
        in_specs=[
            pl.BlockSpec((4, k, bm), lambda i: (0, 0, i)),
            pl.BlockSpec((c_out, k), lambda i: (0, 0)),
            pl.BlockSpec((c_out, 1), lambda i: (0, 0)),
        ],
        out_specs=(
            pl.BlockSpec((c_out, bm), lambda i: (0, i)),
            pl.BlockSpec((1, c_out, 2), lambda i: (i, 0, 0)),
        ),
    )
    z, stats = pl.pallas_call(
        kernel,
        out_shape=(
            jax.ShapeDtypeStruct((c_out, m_pad), jnp.float32),   # activations
            jax.ShapeDtypeStruct((g, c_out, 2), jnp.float32),    # partial stats
        ),
        grid_spec=grid_spec,
        compiler_params=pltpu.CompilerParams(
            dimension_semantics=("parallel",),
            vmem_limit_bytes=vmem_limit),
    )(p4, w, b)
    sums = jnp.sum(stats[:, :, 0], axis=0)
    ssqs = jnp.sum(stats[:, :, 1], axis=0)
    return z[:, :m], sums, ssqs


def mlp_head(x, w1, b1, w2, b2, *, block_n=1024):
    n, d_in = x.shape
    d_h = w1.shape[1]
    d_out = w2.shape[1]
    n8 = _round_up(n, 8)
    bn = min(block_n, n8)
    g = _round_up(n8, bn) // bn
    n_pad = g * bn
    if n_pad != n:
        x = jnp.pad(x, ((0, n_pad - n), (0, 0)))

    grid_spec = pltpu.PrefetchScalarGridSpec(
        num_scalar_prefetch=0,
        grid=(g,),
        in_specs=[
            pl.BlockSpec((bn, d_in), lambda i: (i, 0)),
            pl.BlockSpec((d_in, d_h), lambda i: (0, 0)),
            pl.BlockSpec((1, d_h), lambda i: (0, 0)),
            pl.BlockSpec((d_h, d_out), lambda i: (0, 0)),
            pl.BlockSpec((1, d_out), lambda i: (0, 0)),
        ],
        out_specs=pl.BlockSpec((bn, d_out), lambda i: (i, 0)),
    )
    out = pl.pallas_call(
        _mlp_head_kernel,
        out_shape=jax.ShapeDtypeStruct((n_pad, d_out), jnp.float32),
        grid_spec=grid_spec,
        compiler_params=pltpu.CompilerParams(
            dimension_semantics=("parallel",),
            vmem_limit_bytes=32 * 1024 * 1024),
    )(x, w1, b1, w2, b2)
    return out[:n]


# ------------------------------ JAX glue ------------------------------------

def im2col_pool_cnhw(x, kh, kw):
    """x: (C, N, H, W) -> (4, C*kh*kw, N*PH*PW), PH, PW.

    Leading axis = the 4 candidates of each 2x2 maxpool window; contraction
    axis K ordered (c, kh, kw) (torch weight flatten order); M ordered
    (n, ph, pw).  Pure data rearrangement (done once per stage in XLA).
    """
    c, n, h, w = x.shape
    oh, ow = h - kh + 1, w - kw + 1
    ph, pw = oh // 2, ow // 2
    cols = [x[:, :, i:i + oh, j:j + ow] for i in range(kh) for j in range(kw)]
    p = jnp.stack(cols, axis=1)                     # (C, kh*kw, N, OH, OW)
    p = p.reshape(c, kh * kw, n, ph, 2, pw, 2)
    p = p.transpose(4, 6, 0, 1, 2, 3, 5)            # (2, 2, C, K', N, PH, PW)
    return p.reshape(4, c * kh * kw, n * ph * pw), ph, pw


def bn_scale_shift(sums, ssqs, count, gamma, beta):
    """Training-mode BN (batch mean, biased variance) as a per-channel affine."""
    mean = sums / count
    var = ssqs / count - mean * mean                # biased variance
    scale = gamma * jax.lax.rsqrt(var + EPS)
    shift = beta - mean * scale
    return scale, shift


# ------------------------------ Model ---------------------------------------

def init_params(key):
    ks = jax.random.split(key, 6)
    return {
        "conv1_w": 0.1 * jax.random.normal(ks[0], (10, 1, 5, 5), jnp.float32),
        "conv1_b": 0.1 * jax.random.normal(ks[1], (10,), jnp.float32),
        "conv2_w": 0.05 * jax.random.normal(ks[2], (20, 10, 5, 5), jnp.float32),
        "conv2_b": 0.05 * jax.random.normal(ks[3], (20,), jnp.float32),
        "bn1_gamma": jnp.ones((10,), jnp.float32),
        "bn1_beta": jnp.zeros((10,), jnp.float32),
        "bn2_gamma": jnp.ones((20,), jnp.float32),
        "bn2_beta": jnp.zeros((20,), jnp.float32),
        "fc1_w": 0.05 * jax.random.normal(ks[4], (50, 320), jnp.float32),
        "fc1_b": jnp.zeros((50,), jnp.float32),
        "fc2_w": 0.1 * jax.random.normal(ks[5], (10, 50), jnp.float32),
        "fc2_b": jnp.zeros((10,), jnp.float32),
    }


def mnist_forward(x, p, *, patch_dtype=jnp.bfloat16):
    n = x.shape[0]
    pd = patch_dtype

    # conv1 (1->10, k=5) + maxpool2 + relu, BN1 partial stats in-kernel
    p1, ph1, pw1 = im2col_pool_cnhw(jnp.transpose(x, (1, 0, 2, 3)), 5, 5)
    w1 = p["conv1_w"].reshape(10, 25).astype(pd)
    z1, s1, ss1 = conv_pool_relu_bnstats(p1.astype(pd), w1,
                                         p["conv1_b"].reshape(10, 1))
    scale1, shift1 = bn_scale_shift(s1, ss1, n * ph1 * pw1,
                                    p["bn1_gamma"], p["bn1_beta"])

    # fold BN1 affine into conv2 weights/bias (conv2 is linear); K = (cin,kh,kw)
    w2f = p["conv2_w"].reshape(20, 250)
    w2_eff = (w2f * jnp.repeat(scale1, 25)[None, :]).astype(pd)
    b2_eff = p["conv2_b"] + w2f @ jnp.repeat(shift1, 25)

    # conv2 (10->20, k=5) + maxpool2 + relu, BN2 partial stats; z1 is consumed
    # directly in its (C, N, PH, PW) kernel-output layout (free reshape) --
    # no NCHW transpose round trip between the stages.
    z1_cnhw = z1.reshape(10, n, ph1, pw1)
    p2, ph2, pw2 = im2col_pool_cnhw(z1_cnhw, 5, 5)
    z2, s2, ss2 = conv_pool_relu_bnstats(p2.astype(pd), w2_eff,
                                         b2_eff.reshape(20, 1))
    scale2, shift2 = bn_scale_shift(s2, ss2, n * ph2 * pw2,
                                    p["bn2_gamma"], p["bn2_beta"])

    # fold BN2 affine into fc1; flatten in torch NCHW order (c, ph, pw)
    sp = ph2 * pw2
    w_fc1_eff = (p["fc1_w"] * jnp.repeat(scale2, sp)[None, :]).T   # (320, 50)
    b_fc1_eff = p["fc1_b"] + p["fc1_w"] @ jnp.repeat(shift2, sp)
    feat = z2.reshape(20, n, ph2, pw2).transpose(1, 0, 2, 3).reshape(n, 320)

    # fc1 + relu + fc2 + log_softmax (single fused kernel)
    return mlp_head(feat, w_fc1_eff, b_fc1_eff.reshape(1, 50),
                    p["fc2_w"].T, p["fc2_b"].reshape(1, 10))


# ------------------------- pure-JAX reference check -------------------------

def mnist_reference(x, p):
    def conv(x, w, b):
        y = jax.lax.conv_general_dilated(
            x, w, window_strides=(1, 1), padding="VALID",
            dimension_numbers=("NCHW", "OIHW", "NCHW"))
        return y + b.reshape(1, -1, 1, 1)

    def maxpool2(x):
        return jax.lax.reduce_window(
            x, -jnp.inf, jax.lax.max, (1, 1, 2, 2), (1, 1, 2, 2), "VALID")

    def bn(x, g, b):
        mean = jnp.mean(x, axis=(0, 2, 3), keepdims=True)
        var = jnp.mean((x - mean) ** 2, axis=(0, 2, 3), keepdims=True)
        return (x - mean) * jax.lax.rsqrt(var + EPS) \
            * g.reshape(1, -1, 1, 1) + b.reshape(1, -1, 1, 1)

    x = jnp.maximum(maxpool2(conv(x, p["conv1_w"], p["conv1_b"])), 0.0)
    x = bn(x, p["bn1_gamma"], p["bn1_beta"])
    x = jnp.maximum(maxpool2(conv(x, p["conv2_w"], p["conv2_b"])), 0.0)
    x = bn(x, p["bn2_gamma"], p["bn2_beta"])
    x = x.reshape(x.shape[0], -1)
    x = jnp.maximum(x @ p["fc1_w"].T + p["fc1_b"], 0.0)
    logits = x @ p["fc2_w"].T + p["fc2_b"]
    return jax.nn.log_softmax(logits, axis=1)


if __name__ == "__main__":
    key = jax.random.PRNGKey(0)
    k_x, k_p = jax.random.split(key)
    batch = 8
    x = jax.random.normal(k_x, (batch, 1, 28, 28), jnp.float32)  # NCHW MNIST
    params = init_params(k_p)

    ref = jax.block_until_ready(mnist_reference(x, params))

    # Exact-precision path (f32 patches): must match the f32 reference tightly.
    fwd_f32 = jax.jit(lambda a, b: mnist_forward(a, b, patch_dtype=jnp.float32))
    out_f32 = jax.block_until_ready(fwd_f32(x, params))
    assert out_f32.shape == (batch, 10), out_f32.shape
    assert jnp.allclose(out_f32, ref, atol=1e-3, rtol=1e-3), (
        "f32 path mismatch vs reference",
        float(jnp.max(jnp.abs(out_f32 - ref))))

    # Performance path (default): bf16 patches/weights, f32 MXU accumulation.
    fwd = jax.jit(mnist_forward)
    out = jax.block_until_ready(fwd(x, params))
    assert out.shape == (batch, 10), out.shape
    assert jnp.allclose(out, ref, atol=5e-2, rtol=5e-2), (
        "bf16 path mismatch vs reference",
        float(jnp.max(jnp.abs(out - ref))))

    print("KERNEL_OK")
</pallas_src>

<mosaic_0001>
module attributes {stable_mosaic.version = 11 : i64} {
  func.func @_conv_pool_relu_kernel(%arg0: i32, %arg1: memref<4x25x1152xf32, #tpu.memory_space<vmem>>, %arg2: memref<10x25xf32, #tpu.memory_space<vmem>>, %arg3: memref<10x1xf32, #tpu.memory_space<vmem>>, %arg4: memref<10x1152xf32, #tpu.memory_space<vmem>>, %arg5: memref<1x10x2xf32, #tpu.memory_space<vmem>>) attributes {dimension_semantics = [#tpu.dimension_semantics<parallel>], iteration_bounds = array<i64: 1>, scalar_prefetch = 0 : i64, scratch_operands = 0 : i64, tpu.core_type = #tpu.core_type<tc>, window_params = [{transform_indices = @transform_0, window_bounds = array<i64: 4, 25, 1152>}, {pipeline_mode = #tpu.pipeline_mode<synchronous>, transform_indices = @transform_1, window_bounds = array<i64: 10, 25>}, {pipeline_mode = #tpu.pipeline_mode<synchronous>, transform_indices = @transform_2, window_bounds = array<i64: 10, 1>}, {transform_indices = @transform_3, window_bounds = array<i64: 10, 1152>}, {transform_indices = @transform_4, window_bounds = array<i64: 1, 10, 2>}]} {
    %c0 = arith.constant 0 : index
    %c0_0 = arith.constant 0 : index
    %0 = vector.load %arg2[%c0, %c0_0] : memref<10x25xf32, #tpu.memory_space<vmem>>, vector<10x25xf32>
    %c0_1 = arith.constant 0 : index
    %c0_2 = arith.constant 0 : index
    %c0_3 = arith.constant 0 : index
    %1 = vector.load %arg1[%c0_1, %c0_2, %c0_3] : memref<4x25x1152xf32, #tpu.memory_space<vmem>>, vector<1x25x1152xf32>
    %2 = vector.shape_cast %1 : vector<1x25x1152xf32> to vector<25x1152xf32>
    %cst = arith.constant dense<0.000000e+00> : vector<10x1152xf32>
    %3 = tpu.matmul %0, %2, %cst {dimension_numbers = #tpu.dot_dimension_numbers<[1], [0], [0], [1], [0, 0, 1, 1], [], []>} : vector<10x25xf32>, vector<25x1152xf32>, vector<10x1152xf32> -> vector<10x1152xf32>
    %c1 = arith.constant 1 : index
    %c0_4 = arith.constant 0 : index
    %c0_5 = arith.constant 0 : index
    %4 = vector.load %arg1[%c1, %c0_4, %c0_5] : memref<4x25x1152xf32, #tpu.memory_space<vmem>>, vector<1x25x1152xf32>
    %5 = vector.shape_cast %4 : vector<1x25x1152xf32> to vector<25x1152xf32>
    %cst_6 = arith.constant dense<0.000000e+00> : vector<10x1152xf32>
    %6 = tpu.matmul %0, %5, %cst_6 {dimension_numbers = #tpu.dot_dimension_numbers<[1], [0], [0], [1], [0, 0, 1, 1], [], []>} : vector<10x25xf32>, vector<25x1152xf32>, vector<10x1152xf32> -> vector<10x1152xf32>
    %c2 = arith.constant 2 : index
    %c0_7 = arith.constant 0 : index
    %c0_8 = arith.constant 0 : index
    %7 = vector.load %arg1[%c2, %c0_7, %c0_8] : memref<4x25x1152xf32, #tpu.memory_space<vmem>>, vector<1x25x1152xf32>
    %8 = vector.shape_cast %7 : vector<1x25x1152xf32> to vector<25x1152xf32>
    %cst_9 = arith.constant dense<0.000000e+00> : vector<10x1152xf32>
    %9 = tpu.matmul %0, %8, %cst_9 {dimension_numbers = #tpu.dot_dimension_numbers<[1], [0], [0], [1], [0, 0, 1, 1], [], []>} : vector<10x25xf32>, vector<25x1152xf32>, vector<10x1152xf32> -> vector<10x1152xf32>
    %c3 = arith.constant 3 : index
    %c0_10 = arith.constant 0 : index
    %c0_11 = arith.constant 0 : index
    %10 = vector.load %arg1[%c3, %c0_10, %c0_11] : memref<4x25x1152xf32, #tpu.memory_space<vmem>>, vector<1x25x1152xf32>
    %11 = vector.shape_cast %10 : vector<1x25x1152xf32> to vector<25x1152xf32>
    %cst_12 = arith.constant dense<0.000000e+00> : vector<10x1152xf32>
    %12 = tpu.matmul %0, %11, %cst_12 {dimension_numbers = #tpu.dot_dimension_numbers<[1], [0], [0], [1], [0, 0, 1, 1], [], []>} : vector<10x25xf32>, vector<25x1152xf32>, vector<10x1152xf32> -> vector<10x1152xf32>
    %13 = arith.maximumf %3, %6 : vector<10x1152xf32>
    %14 = arith.maximumf %9, %12 : vector<10x1152xf32>
    %15 = arith.maximumf %13, %14 : vector<10x1152xf32>
    %c0_13 = arith.constant 0 : index
    %c0_14 = arith.constant 0 : index
    %16 = vector.load %arg3[%c0_13, %c0_14] : memref<10x1xf32, #tpu.memory_space<vmem>>, vector<10x1xf32>
    %17 = vector.broadcast %16 : vector<10x1xf32> to vector<10x1152xf32>
    %18 = arith.addf %15, %17 : vector<10x1152xf32>
    %cst_15 = arith.constant 0.000000e+00 : f32
    %19 = vector.broadcast %cst_15 : f32 to vector<10x1152xf32>
    %20 = arith.maximumf %18, %19 : vector<10x1152xf32>
    %c0_16 = arith.constant 0 : index
    %c0_17 = arith.constant 0 : index
    %21 = vector.load %arg4[%c0_16, %c0_17] : memref<10x1152xf32, #tpu.memory_space<vmem>>, vector<10x1152xf32>
    tpu.vector_store %arg4[%c0_16, %c0_17], %20 {strides = array<i32>} : memref<10x1152xf32, #tpu.memory_space<vmem>>, vector<10x1152xf32>,
    %cst_18 = arith.constant dense<0.000000e+00> : vector<10xf32>
    %22 = vector.multi_reduction <add>, %20, %cst_18 [1] : vector<10x1152xf32> to vector<10xf32>
    %23 = vector.shape_cast %22 : vector<10xf32> to vector<10x1xf32>
    %24 = arith.mulf %20, %20 : vector<10x1152xf32>
    %cst_19 = arith.constant dense<0.000000e+00> : vector<10xf32>
    %25 = vector.multi_reduction <add>, %24, %cst_19 [1] : vector<10x1152xf32> to vector<10xf32>
    %26 = vector.shape_cast %25 : vector<10xf32> to vector<10x1xf32>
    %27 = tpu.concatenate %23, %26 in 1 : vector<10x1xf32>, vector<10x1xf32> -> vector<10x2xf32>
    %c0_20 = arith.constant 0 : index
    %c0_21 = arith.constant 0 : index
    %c0_22 = arith.constant 0 : index
    %28 = vector.load %arg5[%c0_20, %c0_21, %c0_22] : memref<1x10x2xf32, #tpu.memory_space<vmem>>, vector<1x10x2xf32>
    %29 = vector.shape_cast %28 : vector<1x10x2xf32> to vector<10x2xf32>
    %30 = vector.shape_cast %27 : vector<10x2xf32> to vector<1x10x2xf32>
    tpu.vector_store %arg5[%c0_20, %c0_21, %c0_22], %30 {strides = array<i32>} : memref<1x10x2xf32, #tpu.memory_space<vmem>>, vector<1x10x2xf32>,
    return
  }
  func.func @transform_0(%arg0: i32) -> (i32, i32, i32) {
    %c0_i32 = arith.constant 0 : i32
    %c0_i32_0 = arith.constant 0 : i32
    %c0_i32_1 = arith.constant 0 : i32
    return %c0_i32, %c0_i32_0, %arg0 : i32, i32, i32
  }
  func.func @transform_1(%arg0: i32) -> (i32, i32) {
    %c0_i32 = arith.constant 0 : i32
    %c0_i32_0 = arith.constant 0 : i32
    %c0_i32_1 = arith.constant 0 : i32
    return %c0_i32, %c0_i32_0 : i32, i32
  }
  func.func @transform_2(%arg0: i32) -> (i32, i32) {
    %c0_i32 = arith.constant 0 : i32
    %c0_i32_0 = arith.constant 0 : i32
    %c0_i32_1 = arith.constant 0 : i32
    return %c0_i32, %c0_i32_0 : i32, i32
  }
  func.func @transform_3(%arg0: i32) -> (i32, i32) {
    %c0_i32 = arith.constant 0 : i32
    %c0_i32_0 = arith.constant 0 : i32
    return %c0_i32, %arg0 : i32, i32
  }
  func.func @transform_4(%arg0: i32) -> (i32, i32, i32) {
    %c0_i32 = arith.constant 0 : i32
    %c0_i32_0 = arith.constant 0 : i32
    %c0_i32_1 = arith.constant 0 : i32
    return %arg0, %c0_i32, %c0_i32_0 : i32, i32, i32
  }
}

module attributes {stable_mosaic.version = 11 : i64} {
  func.func @_conv_pool_relu_kernel(%arg0: i32, %arg1: memref<4x250x128xf32, #tpu.memory_space<vmem>>, %arg2: memref<20x250xf32, #tpu.memory_space<vmem>>, %arg3: memref<20x1xf32, #tpu.memory_space<vmem>>, %arg4: memref<20x128xf32, #tpu.memory_space<vmem>>, %arg5: memref<1x20x2xf32, #tpu.memory_space<vmem>>) attributes {dimension_semantics = [#tpu.dimension_semantics<parallel>], iteration_bounds = array<i64: 1>, scalar_prefetch = 0 : i64, scratch_operands = 0 : i64, tpu.core_type = #tpu.core_type<tc>, window_params = [{transform_indices = @transform_0, window_bounds = array<i64: 4, 250, 128>}, {pipeline_mode = #tpu.pipeline_mode<synchronous>, transform_indices = @transform_1, window_bounds = array<i64: 20, 250>}, {pipeline_mode = #tpu.pipeline_mode<synchronous>, transform_indices = @transform_2, window_bounds = array<i64: 20, 1>}, {transform_indices = @transform_3, window_bounds = array<i64: 20, 128>}, {transform_indices = @transform_4, window_bounds = array<i64: 1, 20, 2>}]} {
    %c0 = arith.constant 0 : index
    %c0_0 = arith.constant 0 : index
    %0 = vector.load %arg2[%c0, %c0_0] : memref<20x250xf32, #tpu.memory_space<vmem>>, vector<20x250xf32>
    %c0_1 = arith.constant 0 : index
    %c0_2 = arith.constant 0 : index
    %c0_3 = arith.constant 0 : index
    %1 = vector.load %arg1[%c0_1, %c0_2, %c0_3] : memref<4x250x128xf32, #tpu.memory_space<vmem>>, vector<1x250x128xf32>
    %2 = vector.shape_cast %1 : vector<1x250x128xf32> to vector<250x128xf32>
    %cst = arith.constant dense<0.000000e+00> : vector<20x128xf32>
    %3 = tpu.matmul %0, %2, %cst {dimension_numbers = #tpu.dot_dimension_numbers<[1], [0], [0], [1], [0, 0, 1, 1], [], []>} : vector<20x250xf32>, vector<250x128xf32>, vector<20x128xf32> -> vector<20x128xf32>
    %c1 = arith.constant 1 : index
    %c0_4 = arith.constant 0 : index
    %c0_5 = arith.constant 0 : index
    %4 = vector.load %arg1[%c1, %c0_4, %c0_5] : memref<4x250x128xf32, #tpu.memory_space<vmem>>, vector<1x250x128xf32>
    %5 = vector.shape_cast %4 : vector<1x250x128xf32> to vector<250x128xf32>
    %cst_6 = arith.constant dense<0.000000e+00> : vector<20x128xf32>
    %6 = tpu.matmul %0, %5, %cst_6 {dimension_numbers = #tpu.dot_dimension_numbers<[1], [0], [0], [1], [0, 0, 1, 1], [], []>} : vector<20x250xf32>, vector<250x128xf32>, vector<20x128xf32> -> vector<20x128xf32>
    %c2 = arith.constant 2 : index
    %c0_7 = arith.constant 0 : index
    %c0_8 = arith.constant 0 : index
    %7 = vector.load %arg1[%c2, %c0_7, %c0_8] : memref<4x250x128xf32, #tpu.memory_space<vmem>>, vector<1x250x128xf32>
    %8 = vector.shape_cast %7 : vector<1x250x128xf32> to vector<250x128xf32>
    %cst_9 = arith.constant dense<0.000000e+00> : vector<20x128xf32>
    %9 = tpu.matmul %0, %8, %cst_9 {dimension_numbers = #tpu.dot_dimension_numbers<[1], [0], [0], [1], [0, 0, 1, 1], [], []>} : vector<20x250xf32>, vector<250x128xf32>, vector<20x128xf32> -> vector<20x128xf32>
    %c3 = arith.constant 3 : index
    %c0_10 = arith.constant 0 : index
    %c0_11 = arith.constant 0 : index
    %10 = vector.load %arg1[%c3, %c0_10, %c0_11] : memref<4x250x128xf32, #tpu.memory_space<vmem>>, vector<1x250x128xf32>
    %11 = vector.shape_cast %10 : vector<1x250x128xf32> to vector<250x128xf32>
    %cst_12 = arith.constant dense<0.000000e+00> : vector<20x128xf32>
    %12 = tpu.matmul %0, %11, %cst_12 {dimension_numbers = #tpu.dot_dimension_numbers<[1], [0], [0], [1], [0, 0, 1, 1], [], []>} : vector<20x250xf32>, vector<250x128xf32>, vector<20x128xf32> -> vector<20x128xf32>
    %13 = arith.maximumf %3, %6 : vector<20x128xf32>
    %14 = arith.maximumf %9, %12 : vector<20x128xf32>
    %15 = arith.maximumf %13, %14 : vector<20x128xf32>
    %c0_13 = arith.constant 0 : index
    %c0_14 = arith.constant 0 : index
    %16 = vector.load %arg3[%c0_13, %c0_14] : memref<20x1xf32, #tpu.memory_space<vmem>>, vector<20x1xf32>
    %17 = vector.broadcast %16 : vector<20x1xf32> to vector<20x128xf32>
    %18 = arith.addf %15, %17 : vector<20x128xf32>
    %cst_15 = arith.constant 0.000000e+00 : f32
    %19 = vector.broadcast %cst_15 : f32 to vector<20x128xf32>
    %20 = arith.maximumf %18, %19 : vector<20x128xf32>
    %c0_16 = arith.constant 0 : index
    %c0_17 = arith.constant 0 : index
    %21 = vector.load %arg4[%c0_16, %c0_17] : memref<20x128xf32, #tpu.memory_space<vmem>>, vector<20x128xf32>
    tpu.vector_store %arg4[%c0_16, %c0_17], %20 {strides = array<i32>} : memref<20x128xf32, #tpu.memory_space<vmem>>, vector<20x128xf32>,
    %cst_18 = arith.constant dense<0.000000e+00> : vector<20xf32>
    %22 = vector.multi_reduction <add>, %20, %cst_18 [1] : vector<20x128xf32> to vector<20xf32>
    %23 = vector.shape_cast %22 : vector<20xf32> to vector<20x1xf32>
    %24 = arith.mulf %20, %20 : vector<20x128xf32>
    %cst_19 = arith.constant dense<0.000000e+00> : vector<20xf32>
    %25 = vector.multi_reduction <add>, %24, %cst_19 [1] : vector<20x128xf32> to vector<20xf32>
    %26 = vector.shape_cast %25 : vector<20xf32> to vector<20x1xf32>
    %27 = tpu.concatenate %23, %26 in 1 : vector<20x1xf32>, vector<20x1xf32> -> vector<20x2xf32>
    %c0_20 = arith.constant 0 : index
    %c0_21 = arith.constant 0 : index
    %c0_22 = arith.constant 0 : index
    %28 = vector.load %arg5[%c0_20, %c0_21, %c0_22] : memref<1x20x2xf32, #tpu.memory_space<vmem>>, vector<1x20x2xf32>
    %29 = vector.shape_cast %28 : vector<1x20x2xf32> to vector<20x2xf32>
    %30 = vector.shape_cast %27 : vector<20x2xf32> to vector<1x20x2xf32>
    tpu.vector_store %arg5[%c0_20, %c0_21, %c0_22], %30 {strides = array<i32>} : memref<1x20x2xf32, #tpu.memory_space<vmem>>, vector<1x20x2xf32>,
    return
  }
  func.func @transform_0(%arg0: i32) -> (i32, i32, i32) {
    %c0_i32 = arith.constant 0 : i32
    %c0_i32_0 = arith.constant 0 : i32
    %c0_i32_1 = arith.constant 0 : i32
    return %c0_i32, %c0_i32_0, %arg0 : i32, i32, i32
  }
  func.func @transform_1(%arg0: i32) -> (i32, i32) {
    %c0_i32 = arith.constant 0 : i32
    %c0_i32_0 = arith.constant 0 : i32
    %c0_i32_1 = arith.constant 0 : i32
    return %c0_i32, %c0_i32_0 : i32, i32
  }
  func.func @transform_2(%arg0: i32) -> (i32, i32) {
    %c0_i32 = arith.constant 0 : i32
    %c0_i32_0 = arith.constant 0 : i32
    %c0_i32_1 = arith.constant 0 : i32
    return %c0_i32, %c0_i32_0 : i32, i32
  }
  func.func @transform_3(%arg0: i32) -> (i32, i32) {
    %c0_i32 = arith.constant 0 : i32
    %c0_i32_0 = arith.constant 0 : i32
    return %c0_i32, %arg0 : i32, i32
  }
  func.func @transform_4(%arg0: i32) -> (i32, i32, i32) {
    %c0_i32 = arith.constant 0 : i32
    %c0_i32_0 = arith.constant 0 : i32
    %c0_i32_1 = arith.constant 0 : i32
    return %arg0, %c0_i32, %c0_i32_0 : i32, i32, i32
  }
}

module attributes {stable_mosaic.version = 11 : i64} {
  func.func @_mlp_head_kernel(%arg0: i32, %arg1: memref<8x320xf32, #tpu.memory_space<vmem>>, %arg2: memref<320x50xf32, #tpu.memory_space<vmem>>, %arg3: memref<1x50xf32, #tpu.memory_space<vmem>>, %arg4: memref<50x10xf32, #tpu.memory_space<vmem>>, %arg5: memref<1x10xf32, #tpu.memory_space<vmem>>, %arg6: memref<8x10xf32, #tpu.memory_space<vmem>>) attributes {dimension_semantics = [#tpu.dimension_semantics<parallel>], iteration_bounds = array<i64: 1>, scalar_prefetch = 0 : i64, scratch_operands = 0 : i64, tpu.core_type = #tpu.core_type<tc>, window_params = [{transform_indices = @transform_0, window_bounds = array<i64: 8, 320>}, {pipeline_mode = #tpu.pipeline_mode<synchronous>, transform_indices = @transform_1, window_bounds = array<i64: 320, 50>}, {pipeline_mode = #tpu.pipeline_mode<synchronous>, transform_indices = @transform_2, window_bounds = array<i64: 1, 50>}, {pipeline_mode = #tpu.pipeline_mode<synchronous>, transform_indices = @transform_3, window_bounds = array<i64: 50, 10>}, {pipeline_mode = #tpu.pipeline_mode<synchronous>, transform_indices = @transform_4, window_bounds = array<i64: 1, 10>}, {transform_indices = @transform_5, window_bounds = array<i64: 8, 10>}]} {
    %c0 = arith.constant 0 : index
    %c0_0 = arith.constant 0 : index
    %0 = vector.load %arg1[%c0, %c0_0] : memref<8x320xf32, #tpu.memory_space<vmem>>, vector<8x320xf32>
    %c0_1 = arith.constant 0 : index
    %c0_2 = arith.constant 0 : index
    %1 = vector.load %arg2[%c0_1, %c0_2] : memref<320x50xf32, #tpu.memory_space<vmem>>, vector<320x50xf32>
    %cst = arith.constant dense<0.000000e+00> : vector<8x50xf32>
    %2 = tpu.matmul %0, %1, %cst {dimension_numbers = #tpu.dot_dimension_numbers<[1], [0], [0], [1], [0, 0, 1, 1], [], []>} : vector<8x320xf32>, vector<320x50xf32>, vector<8x50xf32> -> vector<8x50xf32>
    %c0_3 = arith.constant 0 : index
    %c0_4 = arith.constant 0 : index
    %3 = vector.load %arg3[%c0_3, %c0_4] : memref<1x50xf32, #tpu.memory_space<vmem>>, vector<1x50xf32>
    %4 = vector.broadcast %3 : vector<1x50xf32> to vector<8x50xf32>
    %5 = arith.addf %2, %4 : vector<8x50xf32>
    %cst_5 = arith.constant 0.000000e+00 : f32
    %6 = vector.broadcast %cst_5 : f32 to vector<8x50xf32>
    %7 = arith.maximumf %5, %6 : vector<8x50xf32>
    %c0_6 = arith.constant 0 : index
    %c0_7 = arith.constant 0 : index
    %8 = vector.load %arg4[%c0_6, %c0_7] : memref<50x10xf32, #tpu.memory_space<vmem>>, vector<50x10xf32>
    %cst_8 = arith.constant dense<0.000000e+00> : vector<8x10xf32>
    %9 = tpu.matmul %7, %8, %cst_8 {dimension_numbers = #tpu.dot_dimension_numbers<[1], [0], [0], [1], [0, 0, 1, 1], [], []>} : vector<8x50xf32>, vector<50x10xf32>, vector<8x10xf32> -> vector<8x10xf32>
    %c0_9 = arith.constant 0 : index
    %c0_10 = arith.constant 0 : index
    %10 = vector.load %arg5[%c0_9, %c0_10] : memref<1x10xf32, #tpu.memory_space<vmem>>, vector<1x10xf32>
    %11 = vector.broadcast %10 : vector<1x10xf32> to vector<8x10xf32>
    %12 = arith.addf %9, %11 : vector<8x10xf32>
    %cst_11 = arith.constant dense<0xFF800000> : vector<8xf32>
    %13 = vector.multi_reduction <maximumf>, %12, %cst_11 [1] : vector<8x10xf32> to vector<8xf32>
    %14 = vector.shape_cast %13 : vector<8xf32> to vector<8x1xf32>
    %15 = vector.broadcast %14 : vector<8x1xf32> to vector<8x10xf32>
    %16 = arith.subf %12, %15 : vector<8x10xf32>
    %17 = math.exp %16 : vector<8x10xf32>
    %cst_12 = arith.constant dense<0.000000e+00> : vector<8xf32>
    %18 = vector.multi_reduction <add>, %17, %cst_12 [1] : vector<8x10xf32> to vector<8xf32>
    %19 = vector.shape_cast %18 : vector<8xf32> to vector<8x1xf32>
    %20 = math.log %19 : vector<8x1xf32>
    %21 = vector.broadcast %20 : vector<8x1xf32> to vector<8x10xf32>
    %22 = arith.subf %16, %21 : vector<8x10xf32>
    %c0_13 = arith.constant 0 : index
    %c0_14 = arith.constant 0 : index
    %23 = vector.load %arg6[%c0_13, %c0_14] : memref<8x10xf32, #tpu.memory_space<vmem>>, vector<8x10xf32>
    tpu.vector_store %arg6[%c0_13, %c0_14], %22 {strides = array<i32>} : memref<8x10xf32, #tpu.memory_space<vmem>>, vector<8x10xf32>,
    return
  }
  func.func @transform_0(%arg0: i32) -> (i32, i32) {
    %c0_i32 = arith.constant 0 : i32
    %c0_i32_0 = arith.constant 0 : i32
    return %arg0, %c0_i32 : i32, i32
  }
  func.func @transform_1(%arg0: i32) -> (i32, i32) {
    %c0_i32 = arith.constant 0 : i32
    %c0_i32_0 = arith.constant 0 : i32
    %c0_i32_1 = arith.constant 0 : i32
    return %c0_i32, %c0_i32_0 : i32, i32
  }
  func.func @transform_2(%arg0: i32) -> (i32, i32) {
    %c0_i32 = arith.constant 0 : i32
    %c0_i32_0 = arith.constant 0 : i32
    %c0_i32_1 = arith.constant 0 : i32
    return %c0_i32, %c0_i32_0 : i32, i32
  }
  func.func @transform_3(%arg0: i32) -> (i32, i32) {
    %c0_i32 = arith.constant 0 : i32
    %c0_i32_0 = arith.constant 0 : i32
    %c0_i32_1 = arith.constant 0 : i32
    return %c0_i32, %c0_i32_0 : i32, i32
  }
  func.func @transform_4(%arg0: i32) -> (i32, i32) {
    %c0_i32 = arith.constant 0 : i32
    %c0_i32_0 = arith.constant 0 : i32
    %c0_i32_1 = arith.constant 0 : i32
    return %c0_i32, %c0_i32_0 : i32, i32
  }
  func.func @transform_5(%arg0: i32) -> (i32, i32) {
    %c0_i32 = arith.constant 0 : i32
    %c0_i32_0 = arith.constant 0 : i32
    return %arg0, %c0_i32 : i32, i32
  }
}

</mosaic_0001>

<bundles_post_ra>
// kernel: _lambda_.3
= control target key start
LH: loop header
LB: loop body
LE: loop exit
PB: predicated region body
PF: predicated region fallthrough
CT: control target
= control target key end

     0   :  { %vm61_vm0 = vcmask 1040384   ;;  %v2280_v3 = vmov 0.0   ;;  %vm54_vm1 = vcmask 203776   ;;  %vm1943_vm2 = vcmask 1041408   ;;  %s3172_s0 = inlined_call_operand.vmem [shape: f32[4,25,1152], index: 0, kind: input, shape index: {}]   ;;  %s3173_s1 = inlined_call_operand.vmem [shape: f32[10,25], index: 1, kind: input, shape index: {}]   ;;  %s3174_s2 = inlined_call_operand.vmem [shape: f32[10,1], index: 2, kind: input, shape index: {}]   ;;  %s3175_s3 = inlined_call_operand.vmem [shape: f32[10,1152], index: 3, kind: output, shape index: {0}]   ;;  %s3176_s4 = inlined_call_operand.vmem [shape: f32[1,10,2], index: 4, kind: output, shape index: {1}]  }
   0x1   :  { %v46_v0 = vld [vmem:[%s3172_s0 + $0xe0] sm:$0x1]  ;;  %v48_v1 = vld [vmem:[%s3172_s0 + $0xf0] sm:$0x1]  ;;  %v45_v2 = vld [vmem:[%s3172_s0 + $0xd8] sm:$0x1]  ;;  %153 = vmatprep.mubr.f32.mxu0 %v2280_v3  ;;  %230 = vmatprep.mubr.f32.mxu1 %v2280_v3 }
   0x2   :  { %2025 = vmatprep.subr.msk.mxu0 %vm61_vm0, %v46_v0  ;;  %2029 = vmatprep.subr.msk.mxu1 %vm61_vm0, %v48_v1  ;;  %v47_v4 = vld [vmem:[%s3172_s0 + $0xe8] sm:$0x1]  ;;  %v37_v5 = vld [vmem:[%s3172_s0 + $0x98] sm:$0xff]  ;;  %v36_v7 = vld [vmem:[%s3172_s0 + $0x90] sm:$0xff]  ;;  %vm2010_vm3 = vcmask 7168   ;;  %vm2013_vm4 = vcmask 15360  }
   0x3   :  { %v39_v6 = vld [vmem:[%s3172_s0 + $0xa8] sm:$0xff]  ;;  %2026 = vmatpush1.msk.msra.mxu0 %vm61_vm0, %v45_v2  ;;  %2030 = vmatpush1.msk.msra.mxu1 %vm61_vm0, %v47_v4  ;;  %v38_v8 = vld [vmem:[%s3172_s0 + $0xa0] sm:$0xff]  ;;  %v28_v9 = vld [vmem:[%s3172_s0 + $0x50] sm:$0xff]  ;;  %vm2015_vm5 = vcmask 9216  }
   0x4   :  { %115 = vmatprep.subr.mxu0 %v37_v5  ;;  %192 = vmatprep.subr.mxu1 %v39_v6  ;;  %v30_v10 = vld [vmem:[%s3172_s0 + $0x60] sm:$0xff]  ;;  %v27_v11 = vld [vmem:[%s3172_s0 + $0x48] sm:$0xff]  ;;  %v29_v12 = vld [vmem:[%s3172_s0 + $0x58] sm:$0xff] }
   0x5   :  { %116 = vmatpush1.msra.mxu0 %v36_v7  ;;  %193 = vmatpush1.msra.mxu1 %v38_v8  ;;  %v19_v13 = vld [vmem:[%s3172_s0 + $0x8] sm:$0xff]  ;;  %v21_v14 = vld [vmem:[%s3172_s0 + $0x18] sm:$0xff]  ;;  %v18_v15 = vld [vmem:[%s3172_s0] sm:$0xff] }
   0x6   :  { %117 = vmatprep.subr.mxu0 %v28_v9  ;;  %194 = vmatprep.subr.mxu1 %v30_v10  ;;  %v20_v16 = vld [vmem:[%s3172_s0 + $0x10] sm:$0xff]  ;;  %v2364_v17 = vld [vmem:[%s3173_s1] sm:$0xff]  ;;  %v49_v20 = vld [vmem:[%s3172_s0 + $0xf8] sm:$0x1] }
   0x7   :  { %118 = vmatpush1.msra.mxu0 %v27_v11  ;;  %195 = vmatpush1.msra.mxu1 %v29_v12  ;;  %v50_v18 = vld [vmem:[%s3172_s0 + $0x100] sm:$0x1]  ;;  %v52_v19 = vld [vmem:[%s3172_s0 + $0x110] sm:$0x1]  ;;  %v51_v21 = vld [vmem:[%s3172_s0 + $0x108] sm:$0x1] }
   0x8   :  { %119 = vmatprep.subr.mxu0 %v19_v13  ;;  %196 = vmatprep.subr.mxu1 %v21_v14  ;;  %v41_v22 = vld [vmem:[%s3172_s0 + $0xb8] sm:$0xff]  ;;  %v43_v23 = vld [vmem:[%s3172_s0 + $0xc8] sm:$0xff]  ;;  %v40_v24 = vld [vmem:[%s3172_s0 + $0xb0] sm:$0xff] }
   0x9   :  { %120 = vmatpush1.msra.mxu0 %v18_v15  ;;  %197 = vmatpush1.msra.mxu1 %v20_v16  ;;  %v42_v25 = vld [vmem:[%s3172_s0 + $0xc0] sm:$0xff]  ;;  %v2401_v26 = vld [vmem:[%s3173_s1 + $0x8] sm:$0x3]  ;;  %v32_v27 = vld [vmem:[%s3172_s0 + $0x70] sm:$0xff] }
   0xa   :  { %2027 = vmatmul.mubr.msk.f32.vlgmr.msra.gmra.mxu0 %vm54_vm1, %v2364_v17  ;;  %2031 = vmatmul.mubr.msk.f32.vlgmr.msra.gmra.mxu1 %vm54_vm1, %v2364_v17  ;;  %v34_v28 = vld [vmem:[%s3172_s0 + $0x80] sm:$0xff]  ;;  %v31_v29 = vld [vmem:[%s3172_s0 + $0x68] sm:$0xff]  ;;  %v33_v30 = vld [vmem:[%s3172_s0 + $0x78] sm:$0xff] }
   0xb   :  { %2033 = vmatprep.subr.msk.mxu0 %vm61_vm0, %v50_v18  ;;  %2037 = vmatprep.subr.msk.mxu1 %vm61_vm0, %v52_v19  ;;  %v23_v31 = vld [vmem:[%s3172_s0 + $0x28] sm:$0xff]  ;;  %v25_v32 = vld [vmem:[%s3172_s0 + $0x38] sm:$0xff]  ;;  %v22_v33 = vld [vmem:[%s3172_s0 + $0x20] sm:$0xff] }
   0xc   :  { %2034 = vmatpush1.msk.msra.mxu0 %vm61_vm0, %v49_v20  ;;  %2038 = vmatpush1.msk.msra.mxu1 %vm61_vm0, %v51_v21  ;;  %v24_v34 = vld [vmem:[%s3172_s0 + $0x30] sm:$0xff]  ;;  %v53_v35 = vld [vmem:[%s3172_s0 + $0x118] sm:$0x1]  ;;  %v2072_v36 = vld [vmem:[%s3172_s0 + $0x200] sm:$0x1] }
   0xd   :  { %269 = vmatprep.subr.mxu0 %v41_v22  ;;  %346 = vmatprep.subr.mxu1 %v43_v23  ;;  %v2071_v37 = vld [vmem:[%s3172_s0 + $0x1f8] sm:$0x1]  ;;  %v44_v38 = vld [vmem:[%s3172_s0 + $0xd0] sm:$0xff]  ;;  %v35_v41 = vld [vmem:[%s3172_s0 + $0x88] sm:$0xff] }
   0xe   :  { %159 = vmatprep.mubr.f32.mxu0 %v2280_v3  ;;  %236 = vmatprep.mubr.f32.mxu1 %v2280_v3  ;;  %v2063_v39 = vld [vmem:[%s3172_s0 + $0x1b8] sm:$0xff]  ;;  %v2062_v40 = vld [vmem:[%s3172_s0 + $0x1b0] sm:$0xff]  ;;  %v2053_v43 = vld [vmem:[%s3172_s0 + $0x168] sm:$0xff] }
   0xf   :  { %270 = vmatpush1.msra.mxu0 %v40_v24  ;;  %347 = vmatpush1.msra.mxu1 %v42_v25  ;;  %v2054_v42 = vld [vmem:[%s3172_s0 + $0x170] sm:$0xff]  ;;  %v26_v44 = vld [vmem:[%s3172_s0 + $0x40] sm:$0xff]  ;;  %v2045_v45 = vld [vmem:[%s3172_s0 + $0x128] sm:$0xff] }
  0x10   :  { %2028 = vmatmul.mubr.msk.f32.gmra.mxu0 %vm54_vm1, %v2401_v26  ;;  %2032 = vmatmul.mubr.msk.f32.gmra.mxu1 %vm54_vm1, %v2401_v26  ;;  %v2044_v46 = vld [vmem:[%s3172_s0 + $0x120] sm:$0xff]  ;;  %v2074_v47 = vld [vmem:[%s3172_s0 + $0x210] sm:$0x1]  ;;  %v2073_v49 = vld [vmem:[%s3172_s0 + $0x208] sm:$0x1] }
  0x11   :  { %271 = vmatprep.subr.mxu0 %v32_v27  ;;  %348 = vmatprep.subr.mxu1 %v34_v28  ;;  %v2076_v48 = vld [vmem:[%s3172_s0 + $0x220] sm:$0x1]  ;;  %v2075_v50 = vld [vmem:[%s3172_s0 + $0x218] sm:$0x1]  ;;  %v2065_v51 = vld [vmem:[%s3172_s0 + $0x1c8] sm:$0xff] }
  0x12   :  { %272 = vmatpush1.msra.mxu0 %v31_v29  ;;  %349 = vmatpush1.msra.mxu1 %v33_v30  ;;  %v2067_v52 = vld [vmem:[%s3172_s0 + $0x1d8] sm:$0xff]  ;;  %v2064_v53 = vld [vmem:[%s3172_s0 + $0x1c0] sm:$0xff]  ;;  %v2066_v54 = vld [vmem:[%s3172_s0 + $0x1d0] sm:$0xff] }
  0x13   :  { %273 = vmatprep.subr.mxu0 %v23_v31  ;;  %350 = vmatprep.subr.mxu1 %v25_v32  ;;  %v2056_v55 = vld [vmem:[%s3172_s0 + $0x180] sm:$0xff]  ;;  %v2058_v56 = vld [vmem:[%s3172_s0 + $0x190] sm:$0xff]  ;;  %v2055_v57 = vld [vmem:[%s3172_s0 + $0x178] sm:$0xff] }
  0x14   :  { %274 = vmatpush1.msra.mxu0 %v22_v33  ;;  %307 = vmatprep.mubr.f32.mxu0 %v2280_v3  ;;  %v2057_v58 = vld [vmem:[%s3172_s0 + $0x188] sm:$0xff]  ;;  %v2047_v59 = vld [vmem:[%s3172_s0 + $0x138] sm:$0xff]  ;;  %v2046_v61 = vld [vmem:[%s3172_s0 + $0x130] sm:$0xff] }
  0x15   :  { %351 = vmatpush1.msra.mxu1 %v24_v34  ;;  %384 = vmatprep.mubr.f32.mxu1 %v2280_v3  ;;  %v2049_v60 = vld [vmem:[%s3172_s0 + $0x148] sm:$0xff]  ;;  %v2048_v62 = vld [vmem:[%s3172_s0 + $0x140] sm:$0xff]  ;;  %v2078_v63 = vld [vmem:[%s3172_s0 + $0x230] sm:$0x1] }
  0x16   :  { %2035 = vmatmul.mubr.msk.f32.vlgmr.msra.gmra.mxu0 %vm54_vm1, %v2364_v17  ;;  %2039 = vmatmul.mubr.msk.f32.vlgmr.msra.gmra.mxu1 %vm54_vm1, %v2364_v17  ;;  %v2079_v0 = vld [vmem:[%s3172_s0 + $0x238] sm:$0x1]  ;;  %v2077_v1 = vld [vmem:[%s3172_s0 + $0x228] sm:$0x1]  ;;  %v2070_v4 = vld [vmem:[%s3172_s0 + $0x1f0] sm:$0xff] }
  0x17   :  { %2233 = vmatprep.subr.msk.mxu0 %vm61_vm0, %v53_v35  ;;  %2080 = vmatprep.subr.msk.mxu1 %vm61_vm0, %v2072_v36  ;;  %v2069_v2 = vld [vmem:[%s3172_s0 + $0x1e8] sm:$0xff]  ;;  %v2068_v5 = vld [vmem:[%s3172_s0 + $0x1e0] sm:$0xff]  ;;  %v2059_v8 = vld [vmem:[%s3172_s0 + $0x198] sm:$0xff] }
  0x18   :  { %2234 = vmatpush3.msk.msra.mxu0 %vm61_vm0, %v53_v35  ;;  %2081 = vmatpush1.msk.msra.mxu1 %vm61_vm0, %v2071_v37  ;;  %v2060_v6 = vld [vmem:[%s3172_s0 + $0x1a0] sm:$0xff]  ;;  %v2061_v7 = vld [vmem:[%s3172_s0 + $0x1a8] sm:$0xff]  ;;  %v2051_v9 = vld [vmem:[%s3172_s0 + $0x158] sm:$0xff] }
  0x19   :  { %2235 = vmatprep.subr.mxu0 %v44_v38  ;;  %562 = vmatprep.subr.mxu1 %v2063_v39  ;;  %v2052_v10 = vld [vmem:[%s3172_s0 + $0x160] sm:$0xff]  ;;  %v2050_v11 = vld [vmem:[%s3172_s0 + $0x150] sm:$0xff]  ;;  %v2126_v14 = vld [vmem:[%s3172_s0 + $0x318] sm:$0x1] }
  0x1a   :  { %313 = vmatprep.mubr.f32.mxu0 %v2280_v3  ;;  %390 = vmatprep.mubr.f32.mxu1 %v2280_v3  ;;  %v2127_v12 = vld [vmem:[%s3172_s0 + $0x320] sm:$0x1]  ;;  %v2129_v13 = vld [vmem:[%s3172_s0 + $0x330] sm:$0x1]  ;;  %v2128_v15 = vld [vmem:[%s3172_s0 + $0x328] sm:$0x1] }
  0x1b   :  { %2236 = vmatpush3.msra.mxu0 %v44_v38  ;;  %563 = vmatpush1.msra.mxu1 %v2062_v40  ;;  %v2118_v16 = vld [vmem:[%s3172_s0 + $0x2d8] sm:$0xff]  ;;  %v2120_v18 = vld [vmem:[%s3172_s0 + $0x2e8] sm:$0xff]  ;;  %v2117_v19 = vld [vmem:[%s3172_s0 + $0x2d0] sm:$0xff] }
  0x1c   :  { %2036 = vmatmul.mubr.msk.f32.gmra.mxu0 %vm54_vm1, %v2401_v26  ;;  %2040 = vmatmul.mubr.msk.f32.gmra.mxu1 %vm54_vm1, %v2401_v26  ;;  %v2119_v20 = vld [vmem:[%s3172_s0 + $0x2e0] sm:$0xff]  ;;  %v2109_v21 = vld [vmem:[%s3172_s0 + $0x290] sm:$0xff]  ;;  %v2108_v23 = vld [vmem:[%s3172_s0 + $0x288] sm:$0xff] }
  0x1d   :  { %2237 = vmatprep.subr.mxu0 %v35_v41  ;;  %564 = vmatprep.subr.mxu1 %v2054_v42  ;;  %v2111_v22 = vld [vmem:[%s3172_s0 + $0x2a0] sm:$0xff]  ;;  %v2110_v24 = vld [vmem:[%s3172_s0 + $0x298] sm:$0xff]  ;;  %v2100_v25 = vld [vmem:[%s3172_s0 + $0x248] sm:$0xff] }
  0x1e   :  { %2238 = vmatpush3.msra.mxu0 %v35_v41  ;;  %565 = vmatpush1.msra.mxu1 %v2053_v43  ;;  %v2102_v27 = vld [vmem:[%s3172_s0 + $0x258] sm:$0xff]  ;;  %v2099_v28 = vld [vmem:[%s3172_s0 + $0x240] sm:$0xff]  ;;  %v2101_v29 = vld [vmem:[%s3172_s0 + $0x250] sm:$0xff] }
  0x1f   :  { %2239 = vmatprep.subr.mxu0 %v26_v44  ;;  %566 = vmatprep.subr.mxu1 %v2045_v45  ;;  %v2131_v30 = vld [vmem:[%s3172_s0 + $0x340] sm:$0x1]  ;;  %v2133_v31 = vld [vmem:[%s3172_s0 + $0x350] sm:$0x1]  ;;  %v2130_v32 = vld [vmem:[%s3172_s0 + $0x338] sm:$0x1] }
  0x20   :  { %2240 = vmatpush3.msra.mxu0 %v26_v44  ;;  %2241 = vmatprep.mubr.msk.f32.mxu0 %vm54_vm1, %v2364_v17  ;;  %v2132_v33 = vld [vmem:[%s3172_s0 + $0x348] sm:$0x1]  ;;  %v2122_v34 = vld [vmem:[%s3172_s0 + $0x2f8] sm:$0xff]  ;;  %v2121_v36 = vld [vmem:[%s3172_s0 + $0x2f0] sm:$0xff] }
  0x21   :  { %567 = vmatpush1.msra.mxu1 %v2044_v46  ;;  %600 = vmatprep.mubr.f32.mxu1 %v2280_v3  ;;  %v2124_v35 = vld [vmem:[%s3172_s0 + $0x308] sm:$0xff]  ;;  %v2123_v37 = vld [vmem:[%s3172_s0 + $0x300] sm:$0xff]  ;;  %v2113_v38 = vld [vmem:[%s3172_s0 + $0x2b0] sm:$0xff] }
  0x22   :  { %2242 = vmatmul.mubr.msk.f32.vlgmr.msra.gmra.mxu0 %vm54_vm1, %v2401_v26  ;;  %2082 = vmatmul.mubr.msk.f32.vlgmr.msra.gmra.mxu1 %vm54_vm1, %v2364_v17  ;;  %v2115_v39 = vld [vmem:[%s3172_s0 + $0x2c0] sm:$0xff]  ;;  %v2112_v40 = vld [vmem:[%s3172_s0 + $0x2a8] sm:$0xff]  ;;  %v2114_v41 = vld [vmem:[%s3172_s0 + $0x2b8] sm:$0xff] }
  0x23   :  { %2084 = vmatprep.subr.msk.mxu0 %vm61_vm0, %v2074_v47  ;;  %2088 = vmatprep.subr.msk.mxu1 %vm61_vm0, %v2076_v48  ;;  %v2104_v42 = vld [vmem:[%s3172_s0 + $0x268] sm:$0xff]  ;;  %v2106_v43 = vld [vmem:[%s3172_s0 + $0x278] sm:$0xff]  ;;  %v2103_v44 = vld [vmem:[%s3172_s0 + $0x260] sm:$0xff] }
  0x24   :  { %2085 = vmatpush1.msk.msra.mxu0 %vm61_vm0, %v2073_v49  ;;  %2089 = vmatpush1.msk.msra.mxu1 %vm61_vm0, %v2075_v50  ;;  %v2105_v45 = vld [vmem:[%s3172_s0 + $0x270] sm:$0xff]  ;;  %v2134_v46 = vld [vmem:[%s3172_s0 + $0x358] sm:$0x1]  ;;  %v2182_v47 = vld [vmem:[%s3172_s0 + $0x440] sm:$0x1] }
  0x25   :  { %639 = vmatprep.subr.mxu0 %v2065_v51  ;;  %716 = vmatprep.subr.mxu1 %v2067_v52  ;;  %v2181_v48 = vld [vmem:[%s3172_s0 + $0x438] sm:$0x1]  ;;  %v2125_v49 = vld [vmem:[%s3172_s0 + $0x310] sm:$0xff]  ;;  %v2116_v52 = vld [vmem:[%s3172_s0 + $0x2c8] sm:$0xff] }
  0x26   :  { %606 = vmatprep.mubr.f32.mxu1 %v2280_v3  ;;  %640 = vmatpush1.msra.mxu0 %v2064_v53  ;;  %v2173_v50 = vld [vmem:[%s3172_s0 + $0x3f8] sm:$0xff]  ;;  %v2172_v51 = vld [vmem:[%s3172_s0 + $0x3f0] sm:$0xff] }
  0x27   :  { %717 = vmatpush1.msra.mxu1 %v2066_v54  ;;  %641 = vmatprep.subr.mxu0 %v2056_v55  ;;  %v2164_v53 = vld [vmem:[%s3172_s0 + $0x3b0] sm:$0xff]  ;;  %v2163_v54 = vld [vmem:[%s3172_s0 + $0x3a8] sm:$0xff]  ;;  %v2107_v55 = vld [vmem:[%s3172_s0 + $0x280] sm:$0xff] }
  0x28   :  { %2083 = vmatmul.mubr.msk.f32.gmra.mxu1 %vm54_vm1, %v2401_v26  ;;  %718 = vmatprep.subr.mxu1 %v2058_v56  ;;  %v2155_v56 = vld [vmem:[%s3172_s0 + $0x368] sm:$0xff] }
  0x29   :  { %642 = vmatpush1.msra.mxu0 %v2055_v57  ;;  %719 = vmatpush1.msra.mxu1 %v2057_v58  ;;  %v2154_v57 = vld [vmem:[%s3172_s0 + $0x360] sm:$0xff]  ;;  %v2184_v58 = vld [vmem:[%s3172_s0 + $0x450] sm:$0x1] }
  0x2a   :  { %643 = vmatprep.subr.mxu0 %v2047_v59  ;;  %720 = vmatprep.subr.mxu1 %v2049_v60  ;;  %v2186_v59 = vld [vmem:[%s3172_s0 + $0x460] sm:$0x1]  ;;  %v2183_v60 = vld [vmem:[%s3172_s0 + $0x448] sm:$0x1] }
  0x2b   :  { %644 = vmatpush1.msra.mxu0 %v2046_v61  ;;  %677 = vmatprep.mubr.f32.mxu0 %v2280_v3  ;;  %v2185_v61 = vld [vmem:[%s3172_s0 + $0x458] sm:$0x1] }
  0x2c   :  { %721 = vmatpush1.msra.mxu1 %v2048_v62  ;;  %754 = vmatprep.mubr.f32.mxu1 %v2280_v3  ;;  %v2175_v62 = vld [vmem:[%s3172_s0 + $0x408] sm:$0xff] }
  0x2d   :  { %2086 = vmatmul.mubr.msk.f32.vlgmr.msra.gmra.mxu0 %vm54_vm1, %v2364_v17  ;;  %2090 = vmatmul.mubr.msk.f32.vlgmr.msra.gmra.mxu1 %vm54_vm1, %v2364_v17 }
  0x2e   :  { %2092 = vmatprep.subr.msk.mxu0 %vm61_vm0, %v2078_v63  ;;  %2244 = vmatprep.subr.msk.mxu1 %vm61_vm0, %v2079_v0  ;;  %v2177_v63 = vld [vmem:[%s3172_s0 + $0x418] sm:$0xff] }
  0x2f   :  { %2093 = vmatpush1.msk.msra.mxu0 %vm61_vm0, %v2077_v1  ;;  %2245 = vmatpush3.msk.msra.mxu1 %vm61_vm0, %v2079_v0  ;;  %v2174_v0 = vld [vmem:[%s3172_s0 + $0x400] sm:$0xff]  ;;  %v2176_v1 = vld [vmem:[%s3172_s0 + $0x410] sm:$0xff] }
  0x30   :  { %793 = vmatprep.subr.mxu0 %v2069_v2  ;;  %2246 = vmatprep.subr.mxu1 %v2070_v4  ;;  %v2166_v2 = vld [vmem:[%s3172_s0 + $0x3c0] sm:$0xff] }
  0x31   :  { %683 = vmatprep.mubr.f32.mxu0 %v2280_v3  ;;  %760 = vmatprep.mubr.f32.mxu1 %v2280_v3 }
  0x32   :  { %794 = vmatpush1.msra.mxu0 %v2068_v5  ;;  %2247 = vmatpush3.msra.mxu1 %v2070_v4  ;;  %v2168_v4 = vld [vmem:[%s3172_s0 + $0x3d0] sm:$0xff]  ;;  %v2165_v5 = vld [vmem:[%s3172_s0 + $0x3b8] sm:$0xff] }
  0x33   :  { %2087 = vmatmul.mubr.msk.f32.gmra.mxu0 %vm54_vm1, %v2401_v26  ;;  %2091 = vmatmul.mubr.msk.f32.gmra.mxu1 %vm54_vm1, %v2401_v26 }
  0x34   :  { %795 = vmatprep.subr.mxu0 %v2060_v6  ;;  %2248 = vmatprep.subr.mxu1 %v2061_v7  ;;  %v2167_v6 = vld [vmem:[%s3172_s0 + $0x3c8] sm:$0xff] }
  0x35   :  { %796 = vmatpush1.msra.mxu0 %v2059_v8  ;;  %2249 = vmatpush3.msra.mxu1 %v2061_v7  ;;  %v2157_v7 = vld [vmem:[%s3172_s0 + $0x378] sm:$0xff]  ;;  %v2159_v8 = vld [vmem:[%s3172_s0 + $0x388] sm:$0xff] }
  0x36   :  { %797 = vmatprep.subr.mxu0 %v2051_v9  ;;  %2250 = vmatprep.subr.mxu1 %v2052_v10  ;;  %v2156_v9 = vld [vmem:[%s3172_s0 + $0x370] sm:$0xff] }
  0x37   :  { %798 = vmatpush1.msra.mxu0 %v2050_v11  ;;  %831 = vmatprep.mubr.f32.mxu0 %v2280_v3  ;;  %v2188_v11 = vld [vmem:[%s3172_s0 + $0x470] sm:$0x1] }
  0x38   :  { %2251 = vmatpush3.msra.mxu1 %v2052_v10  ;;  %2252 = vmatprep.mubr.msk.f32.mxu1 %vm54_vm1, %v2364_v17  ;;  %v2158_v10 = vld [vmem:[%s3172_s0 + $0x380] sm:$0xff] }
  0x39   :  { %2094 = vmatmul.mubr.msk.f32.vlgmr.msra.gmra.mxu0 %vm54_vm1, %v2364_v17  ;;  %2253 = vmatmul.mubr.msk.f32.vlgmr.msra.gmra.mxu1 %vm54_vm1, %v2401_v26 }
  0x3a   :  { %2135 = vmatprep.subr.msk.mxu0 %vm61_vm0, %v2127_v12  ;;  %2139 = vmatprep.subr.msk.mxu1 %vm61_vm0, %v2129_v13  ;;  %v2189_v12 = vld [vmem:[%s3172_s0 + $0x478] sm:$0x1]  ;;  %v2187_v13 = vld [vmem:[%s3172_s0 + $0x468] sm:$0x1] }
  0x3b   :  { %2136 = vmatpush1.msk.msra.mxu0 %vm61_vm0, %v2126_v14  ;;  %2140 = vmatpush1.msk.msra.mxu1 %vm61_vm0, %v2128_v15  ;;  %v2179_v14 = vld [vmem:[%s3172_s0 + $0x428] sm:$0xff]  ;;  %v2180_v15 = vld [vmem:[%s3172_s0 + $0x430] sm:$0xff] }
  0x3c   :  { %1009 = vmatprep.subr.mxu0 %v2118_v16  ;;  %1086 = vmatprep.subr.mxu1 %v2120_v18  ;;  %v2178_v16 = vld [vmem:[%s3172_s0 + $0x420] sm:$0xff] }
  0x3d   :  { %837 = vmatprep.mubr.f32.mxu0 %v2280_v3  ;;  %1010 = vmatpush1.msra.mxu0 %v2117_v19  ;;  %v2170_v18 = vld [vmem:[%s3172_s0 + $0x3e0] sm:$0xff]  ;;  %v2171_v19 = vld [vmem:[%s3172_s0 + $0x3e8] sm:$0xff] }
  0x3e   :  { %1087 = vmatpush1.msra.mxu1 %v2119_v20  ;;  %2095 = vmatmul.mubr.msk.f32.gmra.mxu0 %vm54_vm1, %v2401_v26  ;;  %v2169_v20 = vld [vmem:[%s3172_s0 + $0x3d8] sm:$0xff] }
  0x3f   :  { %1011 = vmatprep.subr.mxu0 %v2109_v21  ;;  %1088 = vmatprep.subr.mxu1 %v2111_v22  ;;  %v2161_v21 = vld [vmem:[%s3172_s0 + $0x398] sm:$0xff]  ;;  %v2162_v22 = vld [vmem:[%s3172_s0 + $0x3a0] sm:$0xff] }
  0x40   :  { %1012 = vmatpush1.msra.mxu0 %v2108_v23  ;;  %1089 = vmatpush1.msra.mxu1 %v2110_v24  ;;  %v2160_v23 = vld [vmem:[%s3172_s0 + $0x390] sm:$0xff]  ;;  %v1868_v24 = vld [vmem:[%s3174_s2 + $0x8] sm:$0x3] }
  0x41   :  { %1013 = vmatprep.subr.mxu0 %v2100_v25  ;;  %1090 = vmatprep.subr.mxu1 %v2102_v27  ;;  %v2281_v25 = vmov 0   ;;  %v1867_v27 = vld [vmem:[%s3174_s2] sm:$0xff] }
  0x42   :  { %1014 = vmatpush1.msra.mxu0 %v2099_v28  ;;  %1047 = vmatprep.mubr.f32.mxu0 %v2280_v3 }
  0x43   :  { %1091 = vmatpush1.msra.mxu1 %v2101_v29  ;;  %1124 = vmatprep.mubr.f32.mxu1 %v2280_v3 }
  0x44   :  { %2137 = vmatmul.mubr.msk.f32.vlgmr.msra.gmra.mxu0 %vm54_vm1, %v2364_v17  ;;  %2141 = vmatmul.mubr.msk.f32.vlgmr.msra.gmra.mxu1 %vm54_vm1, %v2364_v17 }
  0x45   :  { %2143 = vmatprep.subr.msk.mxu0 %vm61_vm0, %v2131_v30  ;;  %2147 = vmatprep.subr.msk.mxu1 %vm61_vm0, %v2133_v31 }
  0x46   :  { %2144 = vmatpush1.msk.msra.mxu0 %vm61_vm0, %v2130_v32  ;;  %2148 = vmatpush1.msk.msra.mxu1 %vm61_vm0, %v2132_v33 }
  0x47   :  { %1163 = vmatprep.subr.mxu0 %v2122_v34  ;;  %1240 = vmatprep.subr.mxu1 %v2124_v35 }
  0x48   :  { %1053 = vmatprep.mubr.f32.mxu0 %v2280_v3  ;;  %1130 = vmatprep.mubr.f32.mxu1 %v2280_v3 }
  0x49   :  { %1164 = vmatpush1.msra.mxu0 %v2121_v36  ;;  %1241 = vmatpush1.msra.mxu1 %v2123_v37 }
  0x4a   :  { %2138 = vmatmul.mubr.msk.f32.gmra.mxu0 %vm54_vm1, %v2401_v26  ;;  %2142 = vmatmul.mubr.msk.f32.gmra.mxu1 %vm54_vm1, %v2401_v26 }
  0x4b   :  { %1165 = vmatprep.subr.mxu0 %v2113_v38  ;;  %1242 = vmatprep.subr.mxu1 %v2115_v39 }
  0x4c   :  { %1166 = vmatpush1.msra.mxu0 %v2112_v40  ;;  %1243 = vmatpush1.msra.mxu1 %v2114_v41 }
  0x4d   :  { %1167 = vmatprep.subr.mxu0 %v2104_v42  ;;  %1244 = vmatprep.subr.mxu1 %v2106_v43 }
  0x4e   :  { %1168 = vmatpush1.msra.mxu0 %v2103_v44  ;;  %1201 = vmatprep.mubr.f32.mxu0 %v2280_v3 }
  0x4f   :  { %1245 = vmatpush1.msra.mxu1 %v2105_v45  ;;  %1278 = vmatprep.mubr.f32.mxu1 %v2280_v3 }
  0x50   :  { %2145 = vmatmul.mubr.msk.f32.vlgmr.msra.gmra.mxu0 %vm54_vm1, %v2364_v17  ;;  %2149 = vmatmul.mubr.msk.f32.vlgmr.msra.gmra.mxu1 %vm54_vm1, %v2364_v17 }
  0x51   :  { %2255 = vmatprep.subr.msk.mxu0 %vm61_vm0, %v2134_v46  ;;  %2190 = vmatprep.subr.msk.mxu1 %vm61_vm0, %v2182_v47 }
  0x52   :  { %2256 = vmatpush3.msk.msra.mxu0 %vm61_vm0, %v2134_v46  ;;  %2191 = vmatpush1.msk.msra.mxu1 %vm61_vm0, %v2181_v48 }
  0x53   :  { %2257 = vmatprep.subr.mxu0 %v2125_v49  ;;  %1456 = vmatprep.subr.mxu1 %v2173_v50 }
  0x54   :  { %1207 = vmatprep.mubr.f32.mxu0 %v2280_v3  ;;  %1284 = vmatprep.mubr.f32.mxu1 %v2280_v3 }
  0x55   :  { %2258 = vmatpush3.msra.mxu0 %v2125_v49  ;;  %1457 = vmatpush1.msra.mxu1 %v2172_v51 }
  0x56   :  { %2146 = vmatmul.mubr.msk.f32.gmra.mxu0 %vm54_vm1, %v2401_v26  ;;  %2150 = vmatmul.mubr.msk.f32.gmra.mxu1 %vm54_vm1, %v2401_v26 }
  0x57   :  { %2259 = vmatprep.subr.mxu0 %v2116_v52  ;;  %1458 = vmatprep.subr.mxu1 %v2164_v53 }
  0x58   :  { %2260 = vmatpush3.msra.mxu0 %v2116_v52  ;;  %1459 = vmatpush1.msra.mxu1 %v2163_v54 }
  0x59   :  { %2261 = vmatprep.subr.mxu0 %v2107_v55  ;;  %1460 = vmatprep.subr.mxu1 %v2155_v56 }
  0x5a   :  { %2262 = vmatpush3.msra.mxu0 %v2107_v55  ;;  %2263 = vmatprep.mubr.msk.f32.mxu0 %vm54_vm1, %v2364_v17 }
  0x5b   :  { %1461 = vmatpush1.msra.mxu1 %v2154_v57  ;;  %1494 = vmatprep.mubr.f32.mxu1 %v2280_v3 }
  0x5c   :  { %2264 = vmatmul.mubr.msk.f32.vlgmr.msra.gmra.mxu0 %vm54_vm1, %v2401_v26  ;;  %2192 = vmatmul.mubr.msk.f32.vlgmr.msra.gmra.mxu1 %vm54_vm1, %v2364_v17 }
  0x5d   :  { %2194 = vmatprep.subr.msk.mxu0 %vm61_vm0, %v2184_v58  ;;  %2198 = vmatprep.subr.msk.mxu1 %vm61_vm0, %v2186_v59 }
  0x5e   :  { %2195 = vmatpush1.msk.msra.mxu0 %vm61_vm0, %v2183_v60  ;;  %2199 = vmatpush1.msk.msra.mxu1 %vm61_vm0, %v2185_v61 }
  0x5f   :  { %1533 = vmatprep.subr.mxu0 %v2175_v62  ;;  %1610 = vmatprep.subr.mxu1 %v2177_v63 }
  0x60   :  { %1500 = vmatprep.mubr.f32.mxu1 %v2280_v3  ;;  %1534 = vmatpush1.msra.mxu0 %v2174_v0 }
  0x61   :  { %1611 = vmatpush1.msra.mxu1 %v2176_v1  ;;  %1535 = vmatprep.subr.mxu0 %v2166_v2 }
  0x62   :  { %2193 = vmatmul.mubr.msk.f32.gmra.mxu1 %vm54_vm1, %v2401_v26  ;;  %1612 = vmatprep.subr.mxu1 %v2168_v4 }
  0x63   :  { %1536 = vmatpush1.msra.mxu0 %v2165_v5  ;;  %1613 = vmatpush1.msra.mxu1 %v2167_v6 }
  0x64   :  { %1537 = vmatprep.subr.mxu0 %v2157_v7  ;;  %1614 = vmatprep.subr.mxu1 %v2159_v8 }
  0x65   :  { %1538 = vmatpush1.msra.mxu0 %v2156_v9  ;;  %1571 = vmatprep.mubr.f32.mxu0 %v2280_v3 }
  0x66   :  { %1615 = vmatpush1.msra.mxu1 %v2158_v10  ;;  %1648 = vmatprep.mubr.f32.mxu1 %v2280_v3 }
  0x67   :  { %2196 = vmatmul.mubr.msk.f32.vlgmr.msra.gmra.mxu0 %vm54_vm1, %v2364_v17  ;;  %2200 = vmatmul.mubr.msk.f32.vlgmr.msra.gmra.mxu1 %vm54_vm1, %v2364_v17 }
  0x68   :  { %2202 = vmatprep.subr.msk.mxu0 %vm61_vm0, %v2188_v11  ;;  %2266 = vmatprep.subr.msk.mxu1 %vm61_vm0, %v2189_v12 }
  0x69   :  { %2203 = vmatpush1.msk.msra.mxu0 %vm61_vm0, %v2187_v13  ;;  %2267 = vmatpush3.msk.msra.mxu1 %vm61_vm0, %v2189_v12 }
  0x6a   :  { %1687 = vmatprep.subr.mxu0 %v2179_v14  ;;  %2268 = vmatprep.subr.mxu1 %v2180_v15 }
  0x6b   :  { %1577 = vmatprep.mubr.f32.mxu0 %v2280_v3  ;;  %1654 = vmatprep.mubr.f32.mxu1 %v2280_v3 }
  0x6c   :  { %1688 = vmatpush1.msra.mxu0 %v2178_v16  ;;  %2269 = vmatpush3.msra.mxu1 %v2180_v15 }
  0x6d   :  { %2197 = vmatmul.mubr.msk.f32.gmra.mxu0 %vm54_vm1, %v2401_v26  ;;  %2201 = vmatmul.mubr.msk.f32.gmra.mxu1 %vm54_vm1, %v2401_v26 }
  0x6e   :  { %1689 = vmatprep.subr.mxu0 %v2170_v18  ;;  %2270 = vmatprep.subr.mxu1 %v2171_v19 }
  0x6f   :  { %1690 = vmatpush1.msra.mxu0 %v2169_v20  ;;  %2271 = vmatpush3.msra.mxu1 %v2171_v19 }
  0x70   :  { %1691 = vmatprep.subr.mxu0 %v2161_v21  ;;  %2272 = vmatprep.subr.mxu1 %v2162_v22 }
  0x71   :  { %1692 = vmatpush1.msra.mxu0 %v2160_v23  ;;  %1725 = vmatprep.mubr.f32.mxu0 %v2280_v3 }
  0x72   :  { %2273 = vmatpush3.msra.mxu1 %v2162_v22  ;;  %2274 = vmatprep.mubr.msk.f32.mxu1 %vm54_vm1, %v2364_v17 }
  0x73   :  { %2204 = vmatmul.mubr.msk.f32.vlgmr.msra.gmra.mxu0 %vm54_vm1, %v2364_v17  ;;  %2275 = vmatmul.mubr.msk.f32.vlgmr.msra.gmra.mxu1 %vm54_vm1, %v2401_v26 }
  0x74   :  { %1731 = vmatprep.mubr.f32.mxu0 %v2280_v3  ;;  %2279 = vset.pattern.permute.xlu0 %v2281_v25 }
  0x75   :  { %1876 = vperm.xlu0 %2279, %v1868_v24  }
  0x77   :  { %2205 = vmatmul.mubr.msk.f32.gmra.mxu0 %vm54_vm1, %v2401_v26 }
  0x79   :  { %1871 = vperm.xlu0 %2279, %v1867_v27  }
  0xca   :  { %v155_v28 = vpop.f32.mrf.mxu0  ;;  %v2907_v29 = vpop.f32.mrf.mxu1 }
  0xcc   :  { %v157_v17 = vpop.f32.mrf.mxu0  ;;  %v2909_v30 = vpop.f32.mrf.mxu1 }
  0xd0   :  { %v2911_v31 = vpop.f32.mrf.mxu0  ;;  %v2913_v3 = vpop.f32.mrf.mxu1 }
  0xd2   :  { %v2915_v32 = vpop.f32.mrf.mxu1  ;;  %v2917_v33 = vpop.f32.mrf.mxu0 }
  0xd6   :  { %v2919_v34 = vpop.f32.mrf.mxu1  ;;  %v2921_v35 = vpop.f32.mrf.mxu0 }
  0xd8   :  { %v2923_v26 = vpop.f32.mrf.mxu1  ;;  %v2925_v36 = vpop.f32.mrf.mxu0 }
  0xdc   :  { %v2927_v37 = vpop.f32.mrf.mxu1  ;;  %v2931_v39 = vpop.f32.mrf.mxu0 }
  0xde   :  { %v2929_v38 = vpop.f32.mrf.mxu1  ;;  %v2933_v41 = vpop.f32.mrf.mxu0 }
  0xe2   :  { %v602_v40 = vpop.f32.mrf.mxu1  ;;  %v2935_v43 = vpop.f32.mrf.mxu0 }
  0xe3   :  { %v1813_v15 = vmax.f32 %v155_v28, %v602_v40 }
  0xe4   :  { %v604_v42 = vpop.f32.mrf.mxu1  ;;  %v2939_v46 = vpop.f32.mrf.mxu0 }
  0xe5   :  { %v1814_v21 = vmax.f32 %v157_v17, %v604_v42 }
  0xe8   :  { %v608_v44 = vpop.f32.mrf.mxu1 }
  0xea   :  { %v2937_v45 = vpop.f32.mrf.mxu1 }
  0xed   :  { %v2941_v47 = vpop.f32.mrf.mxu0  ;;  %v2943_v48 = vpop.f32.mrf.mxu1 }
  0xee   :  { %v1815_v17 = vmax.f32 %v2907_v29, %v2941_v47  ;;  %v1817_v42 = vmax.f32 %v2921_v35, %v2943_v48 }
  0xef   :  { %v2945_v49 = vpop.f32.mrf.mxu0  ;;  %v2947_v50 = vpop.f32.mrf.mxu1 }
  0xf0   :  { %v2987_v12 = vpop.permute.xlu0 %1876  ;;  %v1818_v29 = vmax.f32 %v2925_v36, %v2947_v50 }
  0xf3   :  { %v2949_v51 = vpop.f32.mrf.mxu0  ;;  %v2953_v53 = vpop.f32.mrf.mxu1 }
  0xf4   :  { %v2993_v20 = vpop.permute.xlu0 %1871  ;;  %v1826_v35 = vmax.f32 %v2931_v39, %v2953_v53 }
  0xf5   :  { %v2951_v52 = vpop.f32.mrf.mxu0  ;;  %v2957_v55 = vpop.f32.mrf.mxu1 }
  0xf9   :  { %v2955_v54 = vpop.f32.mrf.mxu0  ;;  %v2961_v57 = vpop.f32.mrf.mxu1 }
  0xfa   :  { %v1819_v47 = vmax.f32 %v2919_v34, %v2955_v54  ;;  %v1830_v36 = vmax.f32 %v2935_v43, %v2961_v57 }
  0xfb   :  { %v2959_v56 = vpop.f32.mrf.mxu0  ;;  %v2967_v60 = vpop.f32.mrf.mxu1 }
  0xfc   :  { %v1820_v39 = vmax.f32 %v2923_v26, %v2959_v56  ;;  %v1821_v53 = vmax.f32 %v2939_v46, %v2967_v60 }
  0xfe   :  { %v2963_v58 = vpop.f32.mrf.mxu0 }
 0x100   :  { %v2965_v59 = vpop.f32.mrf.mxu0 }
 0x104   :  { %v1049_v61 = vpop.f32.mrf.mxu0  ;;  %v2969_v62 = vpop.f32.mrf.mxu1 }
 0x106   :  { %v1051_v63 = vpop.f32.mrf.mxu0  ;;  %v2971_v0 = vpop.f32.mrf.mxu1 }
 0x10a   :  { %v1055_v1 = vpop.f32.mrf.mxu0  ;;  %v2973_v2 = vpop.f32.mrf.mxu1 }
 0x10c   :  { %v2975_v4 = vpop.f32.mrf.mxu1  ;;  %v1057_v5 = vpop.f32.mrf.mxu0 }
 0x110   :  { %v2977_v6 = vpop.f32.mrf.mxu1  ;;  %v1203_v7 = vpop.f32.mrf.mxu0 }
 0x112   :  { %v2979_v8 = vpop.f32.mrf.mxu1  ;;  %v2981_v9 = vpop.f32.mrf.mxu0 }
 0x113   :  { %3177 = vst [vmem:[#allocation2_spill] sm:$0xff] %v2979_v8 }
 0x116   :  { %v2983_v10 = vpop.f32.mrf.mxu1  ;;  %v2989_v13 = vpop.f32.mrf.mxu0 }
 0x117   :  { %3178 = vst [vmem:[#allocation3_spill] sm:$0xff] %v2983_v10  ;;  %v1822_v10 = vmax.f32 %v2911_v31, %v608_v44 }
 0x118   :  { %v2985_v11 = vpop.f32.mrf.mxu1  ;;  %v2991_v16 = vpop.f32.mrf.mxu0 }
 0x119   :  { %3179 = vst [vmem:[#allocation4_spill] sm:$0xff] %v2985_v11 }
 0x11c   :  { %v1496_v14 = vpop.f32.mrf.mxu1  ;;  %v2995_v24 = vpop.f32.mrf.mxu0 }
 0x11d   :  { %v1831_v18 = vmax.f32 %v1049_v61, %v1496_v14  ;;  %v1823_v61 = vmax.f32 %v2917_v33, %v2937_v45  ;;  %v1816_v14 = vmax.f32 %v2909_v30, %v2945_v49  ;;  %v1824_v33 = vmax.f32 %v2913_v3, %v2949_v51 }
 0x11e   :  { %v1498_v19 = vpop.f32.mrf.mxu1  ;;  %v1825_v30 = vmax.f32 %v2915_v32, %v2951_v52  ;;  %v1827_v45 = vmax.f32 %v2933_v41, %v2957_v55 }
 0x11f   :  { %v1849_v22 = vmax.f32 %v1813_v15, %v1831_v18  ;;  %v1832_v23 = vmax.f32 %v1051_v63, %v1498_v19  ;;  %v3008_v15 = vpop.f32.mrf.mxu0 }
 0x121   :  { %v1850_v25 = vmax.f32 %v1814_v21, %v1832_v23  ;;  %v1879_v27 = vadd.f32 %v2993_v20, %v1849_v22 }
 0x122   :  { %v1502_v11 = vpop.f32.mrf.mxu1 }
 0x123   :  { %v1840_v8 = vmax.f32 %v1055_v1, %v1502_v11  ;;  %v1880_v28 = vadd.f32 %v2993_v20, %v1850_v25  ;;  %v1897_v40 = vmax.f32 %v1879_v27, 0.0  ;;  %v1828_v27 = vmax.f32 %v2927_v37, %v2963_v58 }
 0x124   :  { %v1504_v63 = vpop.f32.mrf.mxu1 }
 0x125   :  { %v1858_v31 = vmax.f32 %v1822_v10, %v1840_v8  ;;  %v1841_v44 = vmax.f32 %v1057_v5, %v1504_v63  ;;  %v1898_v1 = vmax.f32 %v1880_v28, 0.0  ;;  %1915 = vst [vmem:[%s3175_s3] sm:$0xff] %v1897_v40  ;;  %v1963_v28 = vmul.f32 %v1897_v40, %v1897_v40 }
 0x127   :  { %v1888_v48 = vadd.f32 %v2987_v12, %v1858_v31  ;;  %v1859_v49 = vmax.f32 %v1823_v61, %v1841_v44  ;;  %v1573_v5 = vpop.f32.mrf.mxu0  ;;  %1916 = vst [vmem:[%s3175_s3 + $0x8] sm:$0xff] %v1898_v1  ;;  %v1650_v3 = vpop.f32.mrf.mxu1  ;;  %v1964_v11 = vmul.f32 %v1898_v1, %v1898_v1  ;;  %v1933_v31 = vadd.f32 %v1898_v1, %v1897_v40 }
 0x128   :  { %v1833_v50 = vmax.f32 %v2969_v62, %v1573_v5  ;;  %v1835_v51 = vmax.f32 %v1203_v7, %v1650_v3 }
 0x129   :  { %v1906_v8 = vmax.f32 %v1888_v48, 0.0  ;;  %v1889_v10 = vadd.f32 %v2987_v12, %v1859_v49  ;;  %v1575_v18 = vpop.f32.mrf.mxu0  ;;  %v1652_v19 = vpop.f32.mrf.mxu1  ;;  %v1981_v44 = vadd.f32 %v1964_v11, %v1963_v28 }
 0x12a   :  { %v1851_v21 = vmax.f32 %v1815_v17, %v1833_v50  ;;  %v1853_v22 = vmax.f32 %v1817_v42, %v1835_v51  ;;  %v1834_v23 = vmax.f32 %v2971_v0, %v1575_v18  ;;  %v1836_v25 = vmax.f32 %v2981_v9, %v1652_v19 }
 0x12b   :  { %1924 = vst [vmem:[%s3175_s3 + $0x48] sm:$0x3] %v1906_v8  ;;  %v1972_v62 = vmul.f32 %v1906_v8, %v1906_v8  ;;  %v1907_v7 = vmax.f32 %v1889_v10, 0.0  ;;  %v1829_v0 = vmax.f32 %v2929_v38, %v2965_v59  ;;  %v1944_v40 = vsel %vm1943_vm2, %v1906_v8, 0.0 }
 0x12c   :  { %v1881_v61 = vadd.f32 %v2993_v20, %v1851_v21  ;;  %v1883_v63 = vadd.f32 %v2993_v20, %v1853_v22  ;;  %v1852_v17 = vmax.f32 %v1816_v14, %v1834_v23  ;;  %v1854_v42 = vmax.f32 %v1818_v29, %v1836_v25 }
 0x12d   :  { %1925 = vst [vmem:[%s3175_s3 + $0x50] sm:$0x3] %v1907_v7  ;;  %v1973_v9 = vmul.f32 %v1907_v7, %v1907_v7  ;;  %v1579_v48 = vpop.f32.mrf.mxu0  ;;  %v1656_v49 = vpop.f32.mrf.mxu1  ;;  %v1945_v5 = vsel %vm1943_vm2, %v1907_v7, 0.0  ;;  %v1991_v1 = vsel %vm1943_vm2, %v1972_v62, 0.0 }
 0x12e   :  { %v1899_v3 = vmax.f32 %v1881_v61, 0.0  ;;  %v1901_v50 = vmax.f32 %v1883_v63, 0.0  ;;  %v1882_v51 = vadd.f32 %v2993_v20, %v1852_v17  ;;  %v1884_v29 = vadd.f32 %v2993_v20, %v1854_v42 }
 0x12f   :  { %v1992_v14 = vsel %vm1943_vm2, %v1973_v9, 0.0  ;;  %v1842_v10 = vmax.f32 %v2973_v2, %v1579_v48  ;;  %v1844_v18 = vmax.f32 %v2989_v13, %v1656_v49  ;;  %v1581_v19 = vpop.f32.mrf.mxu0  ;;  %v1658_v21 = vpop.f32.mrf.mxu1  ;;  %v1946_v7 = vadd.f32 %v1945_v5, %v1944_v40 }
 0x130   :  { %1917 = vst [vmem:[%s3175_s3 + $0x10] sm:$0xff] %v1899_v3  ;;  %v1934_v11 = vadd.f32 %v1933_v31, %v1899_v3  ;;  %v1965_v22 = vmul.f32 %v1899_v3, %v1899_v3  ;;  %1919 = vst [vmem:[%s3175_s3 + $0x20] sm:$0xff] %v1901_v50  ;;  %v1900_v23 = vmax.f32 %v1882_v51, 0.0  ;;  %v3065_v2 = vmax.f32 %v1884_v29, 0.0 }
 0x131   :  { %v1860_v13 = vmax.f32 %v1824_v33, %v1842_v10  ;;  %v1862_v25 = vmax.f32 %v1826_v35, %v1844_v18  ;;  %v1993_v28 = vadd.f32 %v1992_v14, %v1991_v1  ;;  %v1843_v8 = vmax.f32 %v2975_v4, %v1581_v19 }
 0x132   :  { %v1845_v62 = vmax.f32 %v2991_v16, %v1658_v21  ;;  %v3069_v61 = vmul.f32 %v1901_v50, %v1901_v50  ;;  %1918 = vst [vmem:[%s3175_s3 + $0x18] sm:$0xff] %v1900_v23  ;;  %v1935_v63 = vadd.f32 %v1934_v11, %v1900_v23  ;;  %1920 = vst [vmem:[%s3175_s3 + $0x28] sm:$0xff] %v3065_v2 }
 0x133   :  { %v1890_v33 = vadd.f32 %v2987_v12, %v1860_v13  ;;  %v1892_v35 = vadd.f32 %v2987_v12, %v1862_v25  ;;  %v1727_v17 = vpop.f32.mrf.mxu0  ;;  %v2276_v4 = vpop.f32.mrf.mxu1  ;;  %v1861_v16 = vmax.f32 %v1825_v30, %v1843_v8  ;;  %v1982_v48 = vadd.f32 %v1981_v44, %v1965_v22  ;;  %v3180_v44 = vld [vmem:[#allocation2_spill] sm:$0xff] }
 0x134   :  { %v1863_v42 = vmax.f32 %v1827_v45, %v1845_v62  ;;  %v1837_v9 = vmax.f32 %v2977_v6, %v1727_v17  ;;  %v1848_v31 = vmax.f32 %v2995_v24, %v2276_v4  ;;  %v1966_v49 = vmul.f32 %v1900_v23, %v1900_v23  ;;  %v3182_v62 = vld [vmem:[#allocation4_spill] sm:$0xff] }
 0x135   :  { %v1908_v5 = vmax.f32 %v1890_v33, 0.0  ;;  %v1910_v3 = vmax.f32 %v1892_v35, 0.0  ;;  %v1729_v51 = vpop.f32.mrf.mxu0  ;;  %v1891_v14 = vadd.f32 %v2987_v12, %v1861_v16  ;;  %v1804_v52 = vpop.f32.mrf.mxu1  ;;  %v1936_v30 = vadd.f32 %v1935_v63, %v1901_v50 }
 0x136   :  { %v1893_v29 = vadd.f32 %v2987_v12, %v1863_v42  ;;  %v1855_v32 = vmax.f32 %v1819_v47, %v1837_v9  ;;  %v1866_v41 = vmax.f32 %v1830_v36, %v1848_v31  ;;  %v1968_v34 = vmul.f32 %v3065_v2, %v3065_v2 }
 0x137   :  { %1926 = vst [vmem:[%s3175_s3 + $0x58] sm:$0x3] %v1908_v5  ;;  %v1947_v55 = vsel %vm1943_vm2, %v1908_v5, 0.0  ;;  %v1974_v6 = vmul.f32 %v1908_v5, %v1908_v5  ;;  %1928 = vst [vmem:[%s3175_s3 + $0x68] sm:$0x3] %v1910_v3  ;;  %v1733_v24 = vpop.f32.mrf.mxu0  ;;  %v1909_v43 = vmax.f32 %v1891_v14, 0.0  ;;  %v1838_v10 = vmax.f32 %v3180_v44, %v1729_v51 }
 0x138   :  { %v1948_v54 = vadd.f32 %v1947_v55, %v1946_v7  ;;  %v1911_v57 = vmax.f32 %v1893_v29, 0.0  ;;  %v1885_v45 = vadd.f32 %v2993_v20, %v1855_v32  ;;  %v1896_v36 = vadd.f32 %v2987_v12, %v1866_v41  ;;  %v3181_v7 = vld [vmem:[#allocation3_spill] sm:$0xff] }
 0x139   :  { %v1994_v47 = vsel %vm1943_vm2, %v1974_v6, 0.0  ;;  %v1839_v18 = vmax.f32 %v3008_v15, %v1804_v52  ;;  %v1735_v19 = vpop.f32.mrf.mxu0  ;;  %v1951_v21 = vsel %vm1943_vm2, %v1910_v3, 0.0  ;;  %v1976_v50 = vmul.f32 %v1910_v3, %v1910_v3  ;;  %1927 = vst [vmem:[%s3175_s3 + $0x60] sm:$0x3] %v1909_v43 }
 0x13a   :  { %v1949_v40 = vsel %vm1943_vm2, %v1909_v43, 0.0  ;;  %v1975_v1 = vmul.f32 %v1909_v43, %v1909_v43  ;;  %1929 = vst [vmem:[%s3175_s3 + $0x70] sm:$0x3] %v1911_v57  ;;  %v1903_v22 = vmax.f32 %v1885_v45, 0.0  ;;  %v1914_v23 = vmax.f32 %v1896_v36, 0.0 }
 0x13b   :  { %v1950_v11 = vadd.f32 %v1949_v40, %v1948_v54  ;;  %v1856_v15 = vmax.f32 %v1820_v39, %v1838_v10  ;;  %v1995_v13 = vadd.f32 %v1994_v47, %v1993_v28  ;;  %v1857_v25 = vmax.f32 %v1821_v53, %v1839_v18 }
 0x13c   :  { %v1846_v8 = vmax.f32 %v3181_v7, %v1733_v24  ;;  %v1847_v63 = vmax.f32 %v3182_v62, %v1735_v19  ;;  %v1996_v33 = vsel %vm1943_vm2, %v1975_v1, 0.0  ;;  %1921 = vst [vmem:[%s3175_s3 + $0x30] sm:$0xff] %v1903_v22  ;;  %1932 = vst [vmem:[%s3175_s3 + $0x88] sm:$0x3] %v1914_v23  ;;  %v1937_v56 = vadd.f32 %v1936_v30, %v3065_v2 }
 0x13d   :  { %v1886_v26 = vadd.f32 %v2993_v20, %v1856_v15  ;;  %v1983_v46 = vadd.f32 %v1982_v48, %v1966_v49  ;;  %v1887_v60 = vadd.f32 %v2993_v20, %v1857_v25  ;;  %v1952_v28 = vadd.f32 %v1951_v21, %v1950_v11 }
 0x13e   :  { %v1864_v39 = vmax.f32 %v1828_v27, %v1846_v8  ;;  %v1865_v53 = vmax.f32 %v1829_v0, %v1847_v63  ;;  %v1938_v17 = vadd.f32 %v1937_v56, %v1903_v22  ;;  %v1969_v4 = vmul.f32 %v1903_v22, %v1903_v22 }
 0x13f   :  { %v1904_v35 = vmax.f32 %v1886_v26, 0.0  ;;  %v1984_v16 = vadd.f32 %v1983_v46, %v3069_v61  ;;  %v1905_v9 = vmax.f32 %v1887_v60, 0.0  ;;  %v1953_v20 = vsel %vm1943_vm2, %v1911_v57, 0.0 }
 0x140   :  { %v1894_v42 = vadd.f32 %v2987_v12, %v1864_v39  ;;  %v1895_v2 = vadd.f32 %v2987_v12, %v1865_v53  ;;  %v1954_v59 = vadd.f32 %v1953_v20, %v1952_v28  ;;  %v1977_v27 = vmul.f32 %v1911_v57, %v1911_v57 }
 0x141   :  { %1922 = vst [vmem:[%s3175_s3 + $0x38] sm:$0xff] %v1904_v35  ;;  %v1939_v37 = vadd.f32 %v1938_v17, %v1904_v35  ;;  %v1970_v38 = vmul.f32 %v1904_v35, %v1904_v35  ;;  %v1985_v58 = vadd.f32 %v1984_v16, %v1968_v34  ;;  %1923 = vst [vmem:[%s3175_s3 + $0x40] sm:$0xff] %v1905_v9  ;;  %v1998_v49 = vsel %vm1943_vm2, %v1976_v50, 0.0 }
 0x142   :  { %v1912_v0 = vmax.f32 %v1894_v42, 0.0  ;;  %v1913_v31 = vmax.f32 %v1895_v2, 0.0  ;;  %v1997_v48 = vadd.f32 %v1996_v33, %v1995_v13  ;;  %v1971_v29 = vmul.f32 %v1905_v9, %v1905_v9 }
 0x143   :  { %v1940_v61 = vadd.f32 %v1939_v37, %v1905_v9  ;;  %v1986_v12 = vadd.f32 %v1985_v58, %v1969_v4  ;;  %v2000_v55 = vsel %vm1943_vm2, %v1977_v27, 0.0  ;;  %v1959_v54 = vsel %vm1943_vm2, %v1914_v23, 0.0 }
 0x144   :  { %1930 = vst [vmem:[%s3175_s3 + $0x78] sm:$0x3] %v1912_v0  ;;  %1931 = vst [vmem:[%s3175_s3 + $0x80] sm:$0x3] %v1913_v31  ;;  %v1955_v5 = vsel %vm1943_vm2, %v1912_v0, 0.0  ;;  %v1957_v3 = vsel %vm1943_vm2, %v1913_v31, 0.0  ;;  %v1978_v51 = vmul.f32 %v1912_v0, %v1912_v0  ;;  %v1979_v14 = vmul.f32 %v1913_v31, %v1913_v31 }
 0x145   :  { %1941 = vadd.xlane.f32.xlu1 %v1940_v61  ;;  %v1987_v32 = vadd.f32 %v1986_v12, %v1970_v38  ;;  %v1956_v41 = vadd.f32 %v1955_v5, %v1954_v59  ;;  %v1999_v52 = vadd.f32 %v1998_v49, %v1997_v48  ;;  %v1980_v43 = vmul.f32 %v1914_v23, %v1914_v23 }
 0x146   :  { %v2002_v6 = vsel %vm1943_vm2, %v1978_v51, 0.0  ;;  %v2004_v57 = vsel %vm1943_vm2, %v1979_v14, 0.0 }
 0x147   :  { %v1988_v24 = vadd.f32 %v1987_v32, %v1971_v29  ;;  %v1958_v30 = vadd.f32 %v1957_v3, %v1956_v41  ;;  %v2001_v34 = vadd.f32 %v2000_v55, %v1999_v52  ;;  %v2006_v44 = vsel %vm1943_vm2, %v1980_v43, 0.0 }
 0x149   :  { %1989 = vadd.xlane.f32.xlu0 %v1988_v24  ;;  %v1960_v45 = vadd.f32 %v1959_v54, %v1958_v30  ;;  %v2003_v47 = vadd.f32 %v2002_v6, %v2001_v34 }
 0x14b   :  { %1961 = vadd.xlane.f32.xlu1 %v1960_v45  ;;  %v2005_v36 = vadd.f32 %v2004_v57, %v2003_v47 }
 0x14d   :  { %v2007_v10 = vadd.f32 %v2006_v44, %v2005_v36 }
 0x14f   :  { %2008 = vadd.xlane.f32.xlu1 %v2007_v10 }
 0x1ce   :  { %v1942_v18 = vpop.xlane.xlu1 %1941 }
 0x1d2   :  { %v1990_v19 = vpop.xlane.xlu0 %1989 }
 0x1d3   :  { %v2011_v21 = vsel %vm2010_vm3, %v1942_v18, %v1990_v19 }
 0x1d4   :  { %2014 = vst.msk [vmem:[%s3176_s4] sm:$0xff] %vm2013_vm4, %v2011_v21  ;;  %v1962_v50 = vpop.xlane.xlu1 %1961 }
 0x1d8   :  { %v2009_v40 = vpop.xlane.xlu1 %2008 }
 0x1d9   :  { %v2012_v1 = vsel %vm2010_vm3, %v1962_v50, %v2009_v40 }
 0x1da   :  { %2016 = vst.msk [vmem:[%s3176_s4 + $0x8] sm:$0x3] %vm2015_vm5, %v2012_v1 }

// kernel: mul.18
= control target key start
LH: loop header
LB: loop body
LE: loop exit
PB: predicated region body
PF: predicated region fallthrough
CT: control target
= control target key end

     0   :  { %vm9_vm0 = vcmask 23552   ;;  %s97_s12 = smov 125   ;;  %s98_s13 = smov 97   ;;  %vm3_vm1 = vcmask 203776   ;;  %vm13_vm2 = vcmask 179200   ;;  %vm16_vm3 = vcmask 1048552   ;;  %s152_s0 = inlined_call_operand.vmem [shape: f32[10,25], index: 0, kind: input, shape index: {}]   ;;  %s153_s1 = inlined_call_operand.vmem [shape: f32[250], index: 1, kind: output, shape index: {}]  }
   0x1   :  { %v78_v0 = vld [vmem:[%s152_s0 + $0x5] sm:$0x1]   ;;  %v81_v3 = vld [vmem:[%s152_s0 + $0x9] sm:$0x1]   ;;  %v80_v4 = vld [vmem:[%s152_s0 + $0x4] sm:$0x1]  }
   0x2   :  { %v79_v1 = vld [vmem:[%s152_s0 + $0x5] sm:$0x1]   ;;  %26 = vrot.lane.b32.xlu1 %v81_v3, %s98_s13  ;;  %v82_v5 = vld [vmem:[%s152_s0 + $0x3] sm:$0x1]   ;;  %v2_v6 = vld [vmem:[%s152_s0] sm:$0x1]  }
   0x3   :  { %v10_v2 = vsel %vm9_vm0, %v79_v1, %v78_v0  ;;  %s99_s20 = smov 100   ;;  %s100_s21 = smov 75   ;;  %4 = vst.msk [vmem:[#allocation0] sm:$0x1] %vm3_vm1, %v2_v6   ;;  %v83_v7 = vld [vmem:[%s152_s0 + $0x8] sm:$0x1]  }
   0x4   :  { %11 = vrot.lane.b32.xlu0 %v10_v2, %s97_s12  ;;  %v84_v8 = vld [vmem:[%s152_s0 + $0x2] sm:$0x1]   ;;  %s101_s26 = smov 72   ;;  %s102_s27 = smov 50   ;;  %v85_v9 = vld [vmem:[%s152_s0 + $0x7] sm:$0x1]  }
   0x5   :  { %v86_v10 = vld [vmem:[%s152_s0 + $0x1] sm:$0x1]   ;;  %s103_s3 = smov 47   ;;  %s104_s4 = smov 25   ;;  %v87_v11 = vld [vmem:[%s152_s0 + $0x6] sm:$0x1]  }
   0x6   :  { %33 = vrot.lane.b32.xlu1 %v82_v5, %s100_s21  ;;  %s105_s0 = smov 22   ;;  %vm28_vm4 = vcmask 999176   ;;  %vm22_vm5 = vcmask 1023776   ;;  %vm35_vm6 = vcmask 818776   ;;  %vm41_vm7 = vcmask 794176  }
   0x7   :  { %vm48_vm8 = vcmask 613776   ;;  %vm54_vm9 = vcmask 589176   ;;  %vm61_vm10 = vcmask 408776   ;;  %vm67_vm11 = vcmask 384176  }
   0x8   :  { %20 = vrot.lane.b32.xlu0 %v80_v4, %s99_s20 }
   0xa   :  { %46 = vrot.lane.b32.xlu1 %v84_v8, %s102_s27 }
   0xc   :  { %39 = vrot.lane.b32.xlu0 %v83_v7, %s101_s26 }
   0xe   :  { %59 = vrot.lane.b32.xlu1 %v86_v10, %s104_s4 }
  0x10   :  { %52 = vrot.lane.b32.xlu0 %v85_v9, %s103_s3 }
  0x14   :  { %65 = vrot.lane.b32.xlu0 %v87_v11, %s105_s0 }
  0x74   :  { %v27_v13 = vpop.permute.xlu1 %26  }
  0x76   :  { %v12_v12 = vpop.permute.xlu0 %11  }
  0x77   :  { %15 = vst.msk [vmem:[#allocation0 + $0x1] sm:$0x1] %vm13_vm2, %v12_v12  }
  0x78   :  { %17 = vst.msk [vmem:[#allocation0] sm:$0x1] %vm16_vm3, %v12_v12   ;;  %v34_v15 = vpop.permute.xlu1 %33  }
  0x79   :  { %30 = vst.msk [vmem:[#allocation0 + $0x1] sm:$0x1] %vm28_vm4, %v27_v13  }
  0x7a   :  { %v21_v14 = vpop.permute.xlu0 %20  }
  0x7b   :  { %23 = vst.msk [vmem:[#allocation0] sm:$0x1] %vm22_vm5, %v21_v14  }
  0x7c   :  { %36 = vst.msk [vmem:[#allocation0] sm:$0x1] %vm35_vm6, %v34_v15   ;;  %v47_v17 = vpop.permute.xlu1 %46  }
  0x7d   :  { %49 = vst.msk [vmem:[#allocation0] sm:$0x1] %vm48_vm8, %v47_v17  }
  0x7e   :  { %v40_v16 = vpop.permute.xlu0 %39  }
  0x7f   :  { %43 = vst.msk [vmem:[#allocation0 + $0x1] sm:$0x1] %vm41_vm7, %v40_v16  }
  0x80   :  { %v60_v19 = vpop.permute.xlu1 %59  }
  0x81   :  { %62 = vst.msk [vmem:[#allocation0] sm:$0x1] %vm61_vm10, %v60_v19  }
  0x82   :  { %v53_v18 = vpop.permute.xlu0 %52  }
  0x83   :  { %56 = vst.msk [vmem:[#allocation0 + $0x1] sm:$0x1] %vm54_vm9, %v53_v18  }
  0x86   :  { %v66_v20 = vpop.permute.xlu0 %65  }
  0x87   :  { %69 = vst.msk [vmem:[#allocation0 + $0x1] sm:$0x1] %vm67_vm11, %v66_v20  }
  0x8e   :  { %v74_v21 = vld [vmem:[#allocation0] sm:$0x3] }
  0x8f   :  { %77 = vst [vmem:[%s153_s1] sm:$0x3] %v74_v21 }

// kernel: _lambda_.4
= control target key start
LH: loop header
LB: loop body
LE: loop exit
PB: predicated region body
PF: predicated region fallthrough
CT: control target
= control target key end

     0   :  { %vm64_vm0 = vcmask 1041408   ;;  %v846_v3 = vmov 0   ;;  %vm54_vm1 = vcmask 998400   ;;  %vm536_vm2 = vcmask 1043456   ;;  %s1341_s0 = inlined_call_operand.vmem [shape: f32[4,250,128], index: 0, kind: input, shape index: {}]   ;;  %s1342_s1 = inlined_call_operand.vmem [shape: f32[20,250], index: 1, kind: input, shape index: {}]   ;;  %s1343_s2 = inlined_call_operand.vmem [shape: f32[20,1], index: 2, kind: input, shape index: {}]   ;;  %s1344_s3 = inlined_call_operand.vmem [shape: f32[20,128], index: 3, kind: output, shape index: {0}]   ;;  %s1345_s4 = inlined_call_operand.vmem [shape: f32[1,20,2], index: 4, kind: output, shape index: {1}]  }
   0x1   :  { %v53_v0 = vld [vmem:[%s1341_s0 + $0xf8] sm:$0x3]  ;;  %844 = vset.pattern.permute.xlu0 %v846_v3  ;;  %845 = vset.pattern.permute.xlu1 %v846_v3  ;;  %v52_v5 = vld [vmem:[%s1341_s0 + $0xf0] sm:$0xff]  ;;  %v51_v9 = vld [vmem:[%s1341_s0 + $0xe8] sm:$0xff]  ;;  %vm550_vm3 = vcmask 7168   ;;  %vm554_vm4 = vcmask 15360  }
   0x2   :  { %v602_v1 = vld [vmem:[%s1341_s0 + $0x1f8] sm:$0x3]  ;;  %679 = vmatprep.subr.msk.mxu0 %vm64_vm0, %v53_v0  ;;  %v601_v6 = vld [vmem:[%s1341_s0 + $0x1f0] sm:$0xff]  ;;  %v600_v10 = vld [vmem:[%s1341_s0 + $0x1e8] sm:$0xff]  ;;  %vm557_vm5 = vcmask 11264  }
   0x3   :  { %v37_v2 = vld [vmem:[%s1341_s0 + $0x78] sm:$0xff]  ;;  %720 = vmatprep.subr.msk.mxu1 %vm64_vm0, %v602_v1  ;;  %v36_v7 = vld [vmem:[%s1341_s0 + $0x70] sm:$0xff]  ;;  %v35_v11 = vld [vmem:[%s1341_s0 + $0x68] sm:$0xff] }
   0x4   :  { %v586_v4 = vld [vmem:[%s1341_s0 + $0x178] sm:$0xff]  ;;  %680 = vmatpush3.msra.mxu0 %v37_v2  ;;  %v585_v8 = vld [vmem:[%s1341_s0 + $0x170] sm:$0xff]  ;;  %v584_v12 = vld [vmem:[%s1341_s0 + $0x168] sm:$0xff] }
   0x5   :  { %721 = vmatpush3.msra.mxu1 %v586_v4  ;;  %681 = vmatprep.subr.mxu0 %v52_v5  ;;  %v50_v13 = vld [vmem:[%s1341_s0 + $0xe0] sm:$0xff]  ;;  %v49_v17 = vld [vmem:[%s1341_s0 + $0xd8] sm:$0xff]  ;;  %v48_v21 = vld [vmem:[%s1341_s0 + $0xd0] sm:$0xff] }
   0x6   :  { %722 = vmatprep.subr.mxu1 %v601_v6  ;;  %682 = vmatpush3.msra.mxu0 %v36_v7  ;;  %v599_v14 = vld [vmem:[%s1341_s0 + $0x1e0] sm:$0xff]  ;;  %v598_v18 = vld [vmem:[%s1341_s0 + $0x1d8] sm:$0xff]  ;;  %v597_v22 = vld [vmem:[%s1341_s0 + $0x1d0] sm:$0xff] }
   0x7   :  { %723 = vmatpush3.msra.mxu1 %v585_v8  ;;  %683 = vmatprep.subr.mxu0 %v51_v9  ;;  %v34_v15 = vld [vmem:[%s1341_s0 + $0x60] sm:$0xff]  ;;  %v33_v19 = vld [vmem:[%s1341_s0 + $0x58] sm:$0xff]  ;;  %v32_v23 = vld [vmem:[%s1341_s0 + $0x50] sm:$0xff] }
   0x8   :  { %724 = vmatprep.subr.mxu1 %v600_v10  ;;  %v583_v16 = vld [vmem:[%s1341_s0 + $0x160] sm:$0xff]  ;;  %684 = vmatpush3.msra.mxu0 %v35_v11  ;;  %v582_v20 = vld [vmem:[%s1341_s0 + $0x158] sm:$0xff]  ;;  %v581_v24 = vld [vmem:[%s1341_s0 + $0x150] sm:$0xff] }
   0x9   :  { %725 = vmatpush3.msra.mxu1 %v584_v12  ;;  %685 = vmatprep.subr.mxu0 %v50_v13  ;;  %v47_v25 = vld [vmem:[%s1341_s0 + $0xc8] sm:$0xff]  ;;  %v46_v29 = vld [vmem:[%s1341_s0 + $0xc0] sm:$0xff]  ;;  %v45_v33 = vld [vmem:[%s1341_s0 + $0xb8] sm:$0xff] }
   0xa   :  { %726 = vmatprep.subr.mxu1 %v599_v14  ;;  %686 = vmatpush3.msra.mxu0 %v34_v15  ;;  %v596_v26 = vld [vmem:[%s1341_s0 + $0x1c8] sm:$0xff]  ;;  %v595_v30 = vld [vmem:[%s1341_s0 + $0x1c0] sm:$0xff]  ;;  %v594_v34 = vld [vmem:[%s1341_s0 + $0x1b8] sm:$0xff] }
   0xb   :  { %727 = vmatpush3.msra.mxu1 %v583_v16  ;;  %687 = vmatprep.subr.mxu0 %v49_v17  ;;  %v31_v27 = vld [vmem:[%s1341_s0 + $0x48] sm:$0xff]  ;;  %v30_v31 = vld [vmem:[%s1341_s0 + $0x40] sm:$0xff]  ;;  %v29_v35 = vld [vmem:[%s1341_s0 + $0x38] sm:$0xff] }
   0xc   :  { %728 = vmatprep.subr.mxu1 %v598_v18  ;;  %688 = vmatpush3.msra.mxu0 %v33_v19  ;;  %v580_v28 = vld [vmem:[%s1341_s0 + $0x148] sm:$0xff]  ;;  %v579_v32 = vld [vmem:[%s1341_s0 + $0x140] sm:$0xff]  ;;  %v578_v36 = vld [vmem:[%s1341_s0 + $0x138] sm:$0xff] }
   0xd   :  { %729 = vmatpush3.msra.mxu1 %v582_v20  ;;  %689 = vmatprep.subr.mxu0 %v48_v21  ;;  %v44_v37 = vld [vmem:[%s1341_s0 + $0xb0] sm:$0xff]  ;;  %v43_v41 = vld [vmem:[%s1341_s0 + $0xa8] sm:$0xff]  ;;  %v42_v45 = vld [vmem:[%s1341_s0 + $0xa0] sm:$0xff] }
   0xe   :  { %730 = vmatprep.subr.mxu1 %v597_v22  ;;  %690 = vmatpush3.msra.mxu0 %v32_v23  ;;  %v593_v38 = vld [vmem:[%s1341_s0 + $0x1b0] sm:$0xff]  ;;  %v592_v42 = vld [vmem:[%s1341_s0 + $0x1a8] sm:$0xff]  ;;  %v591_v46 = vld [vmem:[%s1341_s0 + $0x1a0] sm:$0xff] }
   0xf   :  { %731 = vmatpush3.msra.mxu1 %v581_v24  ;;  %691 = vmatprep.subr.mxu0 %v47_v25  ;;  %v28_v39 = vld [vmem:[%s1341_s0 + $0x30] sm:$0xff]  ;;  %v27_v43 = vld [vmem:[%s1341_s0 + $0x28] sm:$0xff]  ;;  %v26_v47 = vld [vmem:[%s1341_s0 + $0x20] sm:$0xff] }
  0x10   :  { %732 = vmatprep.subr.mxu1 %v596_v26  ;;  %692 = vmatpush3.msra.mxu0 %v31_v27  ;;  %v577_v40 = vld [vmem:[%s1341_s0 + $0x130] sm:$0xff]  ;;  %v576_v44 = vld [vmem:[%s1341_s0 + $0x128] sm:$0xff]  ;;  %v575_v48 = vld [vmem:[%s1341_s0 + $0x120] sm:$0xff] }
  0x11   :  { %733 = vmatpush3.msra.mxu1 %v580_v28  ;;  %693 = vmatprep.subr.mxu0 %v46_v29  ;;  %v41_v49 = vld [vmem:[%s1341_s0 + $0x98] sm:$0xff]  ;;  %v40_v53 = vld [vmem:[%s1341_s0 + $0x90] sm:$0xff]  ;;  %v39_v57 = vld [vmem:[%s1341_s0 + $0x88] sm:$0xff] }
  0x12   :  { %734 = vmatprep.subr.mxu1 %v595_v30  ;;  %694 = vmatpush3.msra.mxu0 %v30_v31  ;;  %v590_v50 = vld [vmem:[%s1341_s0 + $0x198] sm:$0xff]  ;;  %v589_v54 = vld [vmem:[%s1341_s0 + $0x190] sm:$0xff]  ;;  %v588_v58 = vld [vmem:[%s1341_s0 + $0x188] sm:$0xff] }
  0x13   :  { %735 = vmatpush3.msra.mxu1 %v579_v32  ;;  %695 = vmatprep.subr.mxu0 %v45_v33  ;;  %v25_v51 = vld [vmem:[%s1341_s0 + $0x18] sm:$0xff]  ;;  %v24_v55 = vld [vmem:[%s1341_s0 + $0x10] sm:$0xff]  ;;  %v23_v59 = vld [vmem:[%s1341_s0 + $0x8] sm:$0xff] }
  0x14   :  { %736 = vmatprep.subr.mxu1 %v594_v34  ;;  %696 = vmatpush3.msra.mxu0 %v29_v35  ;;  %v574_v52 = vld [vmem:[%s1341_s0 + $0x118] sm:$0xff]  ;;  %v573_v56 = vld [vmem:[%s1341_s0 + $0x110] sm:$0xff]  ;;  %v572_v60 = vld [vmem:[%s1341_s0 + $0x108] sm:$0xff] }
  0x15   :  { %737 = vmatpush3.msra.mxu1 %v578_v36  ;;  %697 = vmatprep.subr.mxu0 %v44_v37  ;;  %v38_v61 = vld [vmem:[%s1341_s0 + $0x80] sm:$0xff]  ;;  %v1066_v0 = vld [vmem:[%s1342_s1 + $0x8] sm:$0xff]  ;;  %v638_v3 = vld [vmem:[%s1341_s0 + $0x2f8] sm:$0x3] }
  0x16   :  { %738 = vmatprep.subr.mxu1 %v593_v38  ;;  %698 = vmatpush3.msra.mxu0 %v28_v39  ;;  %v587_v62 = vld [vmem:[%s1341_s0 + $0x180] sm:$0xff]  ;;  %v674_v4 = vld [vmem:[%s1341_s0 + $0x3f8] sm:$0x3]  ;;  %v637_v7 = vld [vmem:[%s1341_s0 + $0x2f0] sm:$0xff] }
  0x17   :  { %739 = vmatpush3.msra.mxu1 %v577_v40  ;;  %699 = vmatprep.subr.mxu0 %v43_v41  ;;  %v22_v63 = vld [vmem:[%s1341_s0] sm:$0xff]  ;;  %v622_v5 = vld [vmem:[%s1341_s0 + $0x278] sm:$0xff]  ;;  %v673_v8 = vld [vmem:[%s1341_s0 + $0x3f0] sm:$0xff] }
  0x18   :  { %740 = vmatprep.subr.mxu1 %v592_v42  ;;  %700 = vmatpush3.msra.mxu0 %v27_v43  ;;  %v571_v1 = vld [vmem:[%s1341_s0 + $0x100] sm:$0xff]  ;;  %v658_v6 = vld [vmem:[%s1341_s0 + $0x378] sm:$0xff]  ;;  %v621_v9 = vld [vmem:[%s1341_s0 + $0x270] sm:$0xff] }
  0x19   :  { %741 = vmatpush3.msra.mxu1 %v576_v44  ;;  %701 = vmatprep.subr.mxu0 %v42_v45  ;;  %v1074_v2 = vld [vmem:[%s1342_s1] sm:$0xff]  ;;  %v657_v10 = vld [vmem:[%s1341_s0 + $0x370] sm:$0xff]  ;;  %v636_v11 = vld [vmem:[%s1341_s0 + $0x2e8] sm:$0xff] }
  0x1a   :  { %742 = vmatprep.subr.mxu1 %v591_v46  ;;  %702 = vmatpush3.msra.mxu0 %v26_v47  ;;  %v672_v12 = vld [vmem:[%s1341_s0 + $0x3e8] sm:$0xff]  ;;  %v635_v15 = vld [vmem:[%s1341_s0 + $0x2e0] sm:$0xff]  ;;  %v634_v19 = vld [vmem:[%s1341_s0 + $0x2d8] sm:$0xff] }
  0x1b   :  { %743 = vmatpush3.msra.mxu1 %v575_v48  ;;  %703 = vmatprep.subr.mxu0 %v41_v49  ;;  %v620_v13 = vld [vmem:[%s1341_s0 + $0x268] sm:$0xff]  ;;  %v671_v16 = vld [vmem:[%s1341_s0 + $0x3e0] sm:$0xff]  ;;  %v670_v20 = vld [vmem:[%s1341_s0 + $0x3d8] sm:$0xff] }
  0x1c   :  { %744 = vmatprep.subr.mxu1 %v590_v50  ;;  %704 = vmatpush3.msra.mxu0 %v25_v51  ;;  %v656_v14 = vld [vmem:[%s1341_s0 + $0x368] sm:$0xff]  ;;  %v619_v17 = vld [vmem:[%s1341_s0 + $0x260] sm:$0xff]  ;;  %v618_v21 = vld [vmem:[%s1341_s0 + $0x258] sm:$0xff] }
  0x1d   :  { %745 = vmatpush3.msra.mxu1 %v574_v52  ;;  %705 = vmatprep.subr.mxu0 %v40_v53  ;;  %v655_v18 = vld [vmem:[%s1341_s0 + $0x360] sm:$0xff]  ;;  %v654_v22 = vld [vmem:[%s1341_s0 + $0x358] sm:$0xff]  ;;  %v633_v23 = vld [vmem:[%s1341_s0 + $0x2d0] sm:$0xff] }
  0x1e   :  { %746 = vmatprep.subr.mxu1 %v589_v54  ;;  %706 = vmatpush3.msra.mxu0 %v24_v55  ;;  %v669_v24 = vld [vmem:[%s1341_s0 + $0x3d0] sm:$0xff]  ;;  %v632_v27 = vld [vmem:[%s1341_s0 + $0x2c8] sm:$0xff]  ;;  %v631_v31 = vld [vmem:[%s1341_s0 + $0x2c0] sm:$0xff] }
  0x1f   :  { %747 = vmatpush3.msra.mxu1 %v573_v56  ;;  %707 = vmatprep.subr.mxu0 %v39_v57  ;;  %v617_v25 = vld [vmem:[%s1341_s0 + $0x250] sm:$0xff]  ;;  %v668_v28 = vld [vmem:[%s1341_s0 + $0x3c8] sm:$0xff]  ;;  %v667_v32 = vld [vmem:[%s1341_s0 + $0x3c0] sm:$0xff] }
  0x20   :  { %748 = vmatprep.subr.mxu1 %v588_v58  ;;  %708 = vmatpush3.msra.mxu0 %v23_v59  ;;  %v653_v26 = vld [vmem:[%s1341_s0 + $0x350] sm:$0xff]  ;;  %v616_v29 = vld [vmem:[%s1341_s0 + $0x248] sm:$0xff]  ;;  %v615_v33 = vld [vmem:[%s1341_s0 + $0x240] sm:$0xff] }
  0x21   :  { %749 = vmatpush3.msra.mxu1 %v572_v60  ;;  %709 = vmatprep.subr.mxu0 %v38_v61  ;;  %v652_v30 = vld [vmem:[%s1341_s0 + $0x348] sm:$0xff]  ;;  %v651_v34 = vld [vmem:[%s1341_s0 + $0x340] sm:$0xff]  ;;  %v630_v35 = vld [vmem:[%s1341_s0 + $0x2b8] sm:$0xff] }
  0x22   :  { %750 = vmatprep.subr.mxu1 %v587_v62  ;;  %710 = vmatpush3.msra.mxu0 %v22_v63  ;;  %v666_v36 = vld [vmem:[%s1341_s0 + $0x3b8] sm:$0xff]  ;;  %v629_v39 = vld [vmem:[%s1341_s0 + $0x2b0] sm:$0xff]  ;;  %v628_v43 = vld [vmem:[%s1341_s0 + $0x2a8] sm:$0xff] }
  0x23   :  { %568 = vmatprep.mubr.msk.f32.mxu0 %vm54_vm1, %v1066_v0  ;;  %751 = vmatpush3.msra.mxu1 %v571_v1  ;;  %v614_v37 = vld [vmem:[%s1341_s0 + $0x238] sm:$0xff]  ;;  %v665_v40 = vld [vmem:[%s1341_s0 + $0x3b0] sm:$0xff]  ;;  %v664_v44 = vld [vmem:[%s1341_s0 + $0x3a8] sm:$0xff] }
  0x24   :  { %604 = vmatprep.mubr.msk.f32.mxu1 %vm54_vm1, %v1066_v0  ;;  %133 = vmatmul.mubr.f32.vlgmr.msra.gmra.mxu0 %v1074_v2  ;;  %v650_v38 = vld [vmem:[%s1341_s0 + $0x338] sm:$0xff]  ;;  %v613_v41 = vld [vmem:[%s1341_s0 + $0x230] sm:$0xff]  ;;  %v612_v46 = vld [vmem:[%s1341_s0 + $0x228] sm:$0xff] }
  0x25   :  { %249 = vmatmul.mubr.f32.vlgmr.msra.gmra.mxu1 %v1074_v2  ;;  %761 = vmatprep.subr.msk.mxu0 %vm64_vm0, %v638_v3  ;;  %v649_v42 = vld [vmem:[%s1341_s0 + $0x330] sm:$0xff]  ;;  %v1213_v45 = vld [vmem:[%s1342_s1 + $0x18] sm:$0xff]  ;;  %v648_v47 = vld [vmem:[%s1341_s0 + $0x328] sm:$0xff] }
  0x26   :  { %802 = vmatprep.subr.msk.mxu1 %vm64_vm0, %v674_v4  ;;  %762 = vmatpush3.msra.mxu0 %v622_v5  ;;  %v1224_v48 = vld [vmem:[%s1342_s1 + $0x10] sm:$0xff]  ;;  %v627_v49 = vld [vmem:[%s1341_s0 + $0x2a0] sm:$0xff]  ;;  %v626_v53 = vld [vmem:[%s1341_s0 + $0x298] sm:$0xff] }
  0x27   :  { %803 = vmatpush3.msra.mxu1 %v658_v6  ;;  %763 = vmatprep.subr.mxu0 %v637_v7  ;;  %v663_v50 = vld [vmem:[%s1341_s0 + $0x3a0] sm:$0xff]  ;;  %v662_v54 = vld [vmem:[%s1341_s0 + $0x398] sm:$0xff]  ;;  %v21_v55 = vld [vmem:[%s1342_s1 + $0x28] sm:$0xf] }
  0x28   :  { %804 = vmatprep.subr.mxu1 %v673_v8  ;;  %764 = vmatpush3.msra.mxu0 %v621_v9  ;;  %v611_v51 = vld [vmem:[%s1341_s0 + $0x220] sm:$0xff]  ;;  %v610_v56 = vld [vmem:[%s1341_s0 + $0x218] sm:$0xff]  ;;  %v625_v59 = vld [vmem:[%s1341_s0 + $0x290] sm:$0xff] }
  0x29   :  { %805 = vmatpush3.msra.mxu1 %v657_v10  ;;  %765 = vmatprep.subr.mxu0 %v636_v11  ;;  %v647_v52 = vld [vmem:[%s1341_s0 + $0x320] sm:$0xff]  ;;  %v646_v57 = vld [vmem:[%s1341_s0 + $0x318] sm:$0xff]  ;;  %v661_v60 = vld [vmem:[%s1341_s0 + $0x390] sm:$0xff] }
  0x2a   :  { %806 = vmatprep.subr.mxu1 %v672_v12  ;;  %766 = vmatpush3.msra.mxu0 %v620_v13  ;;  %v20_v58 = vld [vmem:[%s1342_s1 + $0x20] sm:$0xf]  ;;  %v609_v61 = vld [vmem:[%s1341_s0 + $0x210] sm:$0xff]  ;;  %v624_v63 = vld [vmem:[%s1341_s0 + $0x288] sm:$0xff] }
  0x2b   :  { %807 = vmatpush3.msra.mxu1 %v656_v14  ;;  %767 = vmatprep.subr.mxu0 %v635_v15  ;;  %v645_v62 = vld [vmem:[%s1341_s0 + $0x310] sm:$0xff]  ;;  %v660_v1 = vld [vmem:[%s1341_s0 + $0x388] sm:$0xff]  ;;  %v623_v5 = vld [vmem:[%s1341_s0 + $0x280] sm:$0xff] }
  0x2c   :  { %808 = vmatprep.subr.mxu1 %v671_v16  ;;  %768 = vmatpush3.msra.mxu0 %v619_v17  ;;  %v608_v3 = vld [vmem:[%s1341_s0 + $0x208] sm:$0xff]  ;;  %v659_v6 = vld [vmem:[%s1341_s0 + $0x380] sm:$0xff]  ;;  %v507_v9 = vld [vmem:[%s1343_s2 + $0x10] sm:$0xf] }
  0x2d   :  { %809 = vmatpush3.msra.mxu1 %v655_v18  ;;  %769 = vmatprep.subr.mxu0 %v634_v19  ;;  %v644_v4 = vld [vmem:[%s1341_s0 + $0x308] sm:$0xff]  ;;  %v607_v7 = vld [vmem:[%s1341_s0 + $0x200] sm:$0xff] }
  0x2e   :  { %810 = vmatprep.subr.mxu1 %v670_v20  ;;  %770 = vmatpush3.msra.mxu0 %v618_v21  ;;  %v643_v8 = vld [vmem:[%s1341_s0 + $0x300] sm:$0xff]  ;;  %v506_v10 = vld [vmem:[%s1343_s2 + $0x8] sm:$0xff] }
  0x2f   :  { %811 = vmatpush3.msra.mxu1 %v654_v22  ;;  %771 = vmatprep.subr.mxu0 %v633_v23 }
  0x30   :  { %812 = vmatprep.subr.mxu1 %v669_v24  ;;  %772 = vmatpush3.msra.mxu0 %v617_v25 }
  0x31   :  { %813 = vmatpush3.msra.mxu1 %v653_v26  ;;  %773 = vmatprep.subr.mxu0 %v632_v27 }
  0x32   :  { %814 = vmatprep.subr.mxu1 %v668_v28  ;;  %774 = vmatpush3.msra.mxu0 %v616_v29 }
  0x33   :  { %815 = vmatpush3.msra.mxu1 %v652_v30  ;;  %775 = vmatprep.subr.mxu0 %v631_v31 }
  0x34   :  { %816 = vmatprep.subr.mxu1 %v667_v32  ;;  %776 = vmatpush3.msra.mxu0 %v615_v33 }
  0x35   :  { %817 = vmatpush3.msra.mxu1 %v651_v34  ;;  %777 = vmatprep.subr.mxu0 %v630_v35 }
  0x36   :  { %818 = vmatprep.subr.mxu1 %v666_v36  ;;  %778 = vmatpush3.msra.mxu0 %v614_v37 }
  0x37   :  { %819 = vmatpush3.msra.mxu1 %v650_v38  ;;  %779 = vmatprep.subr.mxu0 %v629_v39 }
  0x38   :  { %820 = vmatprep.subr.mxu1 %v665_v40  ;;  %780 = vmatpush3.msra.mxu0 %v613_v41 }
  0x39   :  { %821 = vmatpush3.msra.mxu1 %v649_v42  ;;  %781 = vmatprep.subr.mxu0 %v628_v43 }
  0x3a   :  { %822 = vmatprep.subr.mxu1 %v664_v44  ;;  %569 = vmatprep.mubr.msk.f32.mxu0 %vm54_vm1, %v1213_v45 }
  0x3b   :  { %605 = vmatprep.mubr.msk.f32.mxu1 %vm54_vm1, %v1213_v45  ;;  %782 = vmatpush3.msra.mxu0 %v612_v46 }
  0x3c   :  { %823 = vmatpush3.msra.mxu1 %v648_v47  ;;  %138 = vmatmul.mubr.f32.gmra.mxu0 %v1224_v48 }
  0x3d   :  { %254 = vmatmul.mubr.f32.gmra.mxu1 %v1224_v48  ;;  %783 = vmatprep.subr.mxu0 %v627_v49 }
  0x3e   :  { %824 = vmatprep.subr.mxu1 %v663_v50  ;;  %784 = vmatpush3.msra.mxu0 %v611_v51 }
  0x3f   :  { %825 = vmatpush3.msra.mxu1 %v647_v52  ;;  %785 = vmatprep.subr.mxu0 %v626_v53 }
  0x40   :  { %826 = vmatprep.subr.mxu1 %v662_v54  ;;  %570 = vmatprep.mubr.msk.f32.mxu0 %vm54_vm1, %v21_v55 }
  0x41   :  { %606 = vmatprep.mubr.msk.f32.mxu1 %vm54_vm1, %v21_v55  ;;  %786 = vmatpush3.msra.mxu0 %v610_v56 }
  0x42   :  { %827 = vmatpush3.msra.mxu1 %v646_v57  ;;  %143 = vmatmul.mubr.f32.gmra.mxu0 %v20_v58 }
  0x43   :  { %259 = vmatmul.mubr.f32.gmra.mxu1 %v20_v58  ;;  %787 = vmatprep.subr.mxu0 %v625_v59 }
  0x44   :  { %828 = vmatprep.subr.mxu1 %v661_v60  ;;  %788 = vmatpush3.msra.mxu0 %v609_v61 }
  0x45   :  { %829 = vmatpush3.msra.mxu1 %v645_v62  ;;  %789 = vmatprep.subr.mxu0 %v624_v63 }
  0x46   :  { %830 = vmatprep.subr.mxu1 %v660_v1  ;;  %790 = vmatpush3.msra.mxu0 %v608_v3 }
  0x47   :  { %831 = vmatpush3.msra.mxu1 %v644_v4  ;;  %791 = vmatprep.subr.mxu0 %v623_v5 }
  0x48   :  { %832 = vmatprep.subr.mxu1 %v659_v6  ;;  %792 = vmatpush3.msra.mxu0 %v607_v7 }
  0x49   :  { %640 = vmatprep.mubr.msk.f32.mxu0 %vm54_vm1, %v1066_v0  ;;  %833 = vmatpush3.msra.mxu1 %v643_v8 }
  0x4a   :  { %676 = vmatprep.mubr.msk.f32.mxu1 %vm54_vm1, %v1066_v0  ;;  %365 = vmatmul.mubr.f32.vlgmr.msra.gmra.mxu0 %v1074_v2  ;;  %v505_v0 = vld [vmem:[%s1343_s2] sm:$0xff] }
  0x4b   :  { %481 = vmatmul.mubr.f32.vlgmr.msra.gmra.mxu1 %v1074_v2  ;;  %641 = vmatprep.mubr.msk.f32.mxu0 %vm54_vm1, %v1213_v45 }
  0x4c   :  { %677 = vmatprep.mubr.msk.f32.mxu1 %vm54_vm1, %v1213_v45  ;;  %520 = vperm.xlu0 %844, %v507_v9  }
  0x4d   :  { %515 = vperm.xlu1 %845, %v506_v10  }
  0x4e   :  { %370 = vmatmul.mubr.f32.gmra.mxu0 %v1224_v48 }
  0x4f   :  { %486 = vmatmul.mubr.f32.gmra.mxu1 %v1224_v48  ;;  %642 = vmatprep.mubr.msk.f32.mxu0 %vm54_vm1, %v21_v55 }
  0x50   :  { %678 = vmatprep.mubr.msk.f32.mxu1 %vm54_vm1, %v21_v55  ;;  %510 = vperm.xlu0 %844, %v505_v0  }
  0x52   :  { %375 = vmatmul.mubr.f32.gmra.mxu0 %v20_v58 }
  0x53   :  { %491 = vmatmul.mubr.f32.gmra.mxu1 %v20_v58 }
  0xc7   :  { %v521_v22 = vpop.permute.xlu0 %520 }
  0xc8   :  { %v516_v50 = vpop.permute.xlu1 %515 }
  0xcb   :  { %v511_v37 = vpop.permute.xlu0 %510 }
  0xe4   :  { %v711_v2 = vpop.f32.mrf.mxu0 }
  0xe5   :  { %v752_v11 = vpop.f32.mrf.mxu1 }
  0xe6   :  { %v712_v12 = vpop.f32.mrf.mxu0 }
  0xe7   :  { %v753_v13 = vpop.f32.mrf.mxu1  ;;  %v713_v25 = vadd.f32 %v712_v12, %v711_v2 }
  0xe8   :  { %v754_v26 = vadd.f32 %v753_v13, %v752_v11 }
  0xea   :  { %v496_v35 = vmax.f32 %v713_v25, %v754_v26 }
  0xfc   :  { %v714_v14 = vpop.f32.mrf.mxu0 }
  0xfd   :  { %v755_v15 = vpop.f32.mrf.mxu1 }
  0xfe   :  { %v715_v16 = vpop.f32.mrf.mxu0 }
  0xff   :  { %v756_v17 = vpop.f32.mrf.mxu1  ;;  %v716_v31 = vadd.f32 %v715_v16, %v714_v14 }
 0x100   :  { %v757_v32 = vadd.f32 %v756_v17, %v755_v15 }
 0x102   :  { %v717_v18 = vpop.f32.mrf.mxu0  ;;  %v497_v43 = vmax.f32 %v716_v31, %v757_v32 }
 0x103   :  { %v758_v19 = vpop.f32.mrf.mxu1 }
 0x104   :  { %v718_v20 = vpop.f32.mrf.mxu0 }
 0x105   :  { %v759_v21 = vpop.f32.mrf.mxu1  ;;  %v719_v46 = vadd.f32 %v718_v20, %v717_v18 }
 0x106   :  { %v760_v47 = vadd.f32 %v759_v21, %v758_v19 }
 0x108   :  { %v498_v57 = vmax.f32 %v719_v46, %v760_v47 }
 0x10a   :  { %v793_v23 = vpop.f32.mrf.mxu0 }
 0x10b   :  { %v834_v24 = vpop.f32.mrf.mxu1 }
 0x10c   :  { %v794_v27 = vpop.f32.mrf.mxu0 }
 0x10d   :  { %v835_v28 = vpop.f32.mrf.mxu1  ;;  %v795_v29 = vadd.f32 %v794_v27, %v793_v23 }
 0x10e   :  { %v836_v30 = vadd.f32 %v835_v28, %v834_v24  ;;  %v796_v33 = vpop.f32.mrf.mxu0 }
 0x10f   :  { %v837_v34 = vpop.f32.mrf.mxu1 }
 0x110   :  { %v499_v36 = vmax.f32 %v795_v29, %v836_v30  ;;  %v797_v38 = vpop.f32.mrf.mxu0 }
 0x111   :  { %v838_v39 = vpop.f32.mrf.mxu1  ;;  %v798_v40 = vadd.f32 %v797_v38, %v796_v33 }
 0x112   :  { %v839_v41 = vadd.f32 %v838_v39, %v837_v34  ;;  %v502_v42 = vmax.f32 %v496_v35, %v499_v36  ;;  %v799_v44 = vpop.f32.mrf.mxu0 }
 0x113   :  { %v840_v45 = vpop.f32.mrf.mxu1 }
 0x114   :  { %v500_v48 = vmax.f32 %v798_v40, %v839_v41  ;;  %v523_v49 = vadd.f32 %v511_v37, %v502_v42  ;;  %v800_v51 = vpop.f32.mrf.mxu0 }
 0x115   :  { %v841_v52 = vpop.f32.mrf.mxu1  ;;  %v801_v54 = vadd.f32 %v800_v51, %v799_v44 }
 0x116   :  { %v526_v53 = vmax.f32 %v523_v49, 0.0  ;;  %v842_v55 = vadd.f32 %v841_v52, %v840_v45  ;;  %v503_v56 = vmax.f32 %v497_v43, %v500_v48 }
 0x118   :  { %529 = vst [vmem:[%s1344_s3] sm:$0xff] %v526_v53  ;;  %v501_v58 = vmax.f32 %v801_v54, %v842_v55  ;;  %v524_v59 = vadd.f32 %v516_v50, %v503_v56  ;;  %532 = vadd.xlane.f32.xlu1 %v526_v53  ;;  %v540_v62 = vmul.f32 %v526_v53, %v526_v53 }
 0x11a   :  { %v504_v60 = vmax.f32 %v498_v57, %v501_v58  ;;  %v527_v61 = vmax.f32 %v524_v59, 0.0 }
 0x11c   :  { %530 = vst [vmem:[%s1344_s3 + $0x8] sm:$0xff] %v527_v61  ;;  %534 = vadd.xlane.f32.xlu0 %v527_v61  ;;  %543 = vadd.xlane.f32.xlu1 %v540_v62  ;;  %v525_v63 = vadd.f32 %v521_v22, %v504_v60  ;;  %v541_v6 = vmul.f32 %v527_v61, %v527_v61 }
 0x11e   :  { %v528_v1 = vmax.f32 %v525_v63, 0.0 }
 0x120   :  { %531 = vst [vmem:[%s1344_s3 + $0x10] sm:$0xf] %v528_v1  ;;  %v537_v3 = vsel %vm536_vm2, %v528_v1, 0.0  ;;  %v542_v4 = vmul.f32 %v528_v1, %v528_v1 }
 0x121   :  { %538 = vadd.xlane.f32.xlu0 %v537_v3 }
 0x122   :  { %v547_v5 = vsel %vm536_vm2, %v542_v4, 0.0 }
 0x123   :  { %548 = vadd.xlane.f32.xlu1 %v547_v5 }
 0x125   :  { %545 = vadd.xlane.f32.xlu0 %v541_v6 }
 0x1a1   :  { %v533_v7 = vpop.xlane.xlu1 %532 }
 0x1a5   :  { %v535_v8 = vpop.xlane.xlu0 %534  ;;  %v544_v9 = vpop.xlane.xlu1 %543 }
 0x1a6   :  { %v551_v10 = vsel %vm550_vm3, %v533_v7, %v544_v9 }
 0x1a7   :  { %555 = vst.msk [vmem:[%s1345_s4] sm:$0xff] %vm554_vm4, %v551_v10 }
 0x1aa   :  { %v539_v0 = vpop.xlane.xlu0 %538 }
 0x1ac   :  { %v549_v2 = vpop.xlane.xlu1 %548 }
 0x1ad   :  { %v553_v11 = vsel %vm550_vm3, %v539_v0, %v549_v2 }
 0x1ae   :  { %558 = vst.msk [vmem:[%s1345_s4 + $0x10] sm:$0xf] %vm557_vm5, %v553_v11  ;;  %v546_v12 = vpop.xlane.xlu0 %545 }
 0x1af   :  { %v552_v13 = vsel %vm550_vm3, %v535_v8, %v546_v12 }
 0x1b0   :  { %556 = vst.msk [vmem:[%s1345_s4 + $0x8] sm:$0xff] %vm554_vm4, %v552_v13 }

// kernel: mul.25
= control target key start
LH: loop header
LB: loop body
LE: loop exit
PB: predicated region body
PF: predicated region fallthrough
CT: control target
= control target key end

     0   :  { %s6_s6 = smov 3  ;;  %s20_s9 = smov 3  ;;  %vm3_vm0 = vcmask 130048   ;;  %vm10_vm1 = vcmask 1048448   ;;  %vm17_vm2 = vcmask 917248   ;;  %vm24_vm3 = vcmask 786048   ;;  %s117_s0 = inlined_call_operand.vmem [shape: f32[20,16], index: 0, kind: input, shape index: {}]   ;;  %s118_s1 = inlined_call_operand.vmem [shape: f32[320], index: 1, kind: output, shape index: {}]  }
   0x1   :  { %v59_v0 = vld [vmem:[%s117_s0 + $0x7] ss:$8 sm:%s6_s6]   ;;  %s73_s10 = smov 112   ;;  %v61_v1 = vld [vmem:[%s117_s0 + $0x5] ss:$8 sm:%s20_s9]   ;;  %s13_s13 = smov 3 }
   0x2   :  { %8 = vrot.lane.b32.xlu0 %v59_v0, %s73_s10  ;;  %s74_s14 = smov 80   ;;  %v60_v2 = vld [vmem:[%s117_s0 + $0x6] ss:$8 sm:%s13_s13]   ;;  %s27_s17 = smov 3  ;;  %vm31_vm4 = vcmask 654848   ;;  %vm37_vm5 = vcmask 523648  }
   0x3   :  { %22 = vrot.lane.b32.xlu1 %v61_v1, %s74_s14  ;;  %v62_v3 = vld [vmem:[%s117_s0 + $0x4] ss:$8 sm:%s27_s17]   ;;  %s75_s20 = smov 96   ;;  %v2_v4 = vld [vmem:[%s117_s0] ss:$8 sm:$0x7]  }
   0x4   :  { %s76_s23 = smov 64   ;;  %v63_v5 = vld [vmem:[%s117_s0 + $0x3] ss:$8 sm:$0x7]   ;;  %4 = vst.msk [vmem:[#allocation0] sm:$0x7] %vm3_vm0, %v2_v4  }
   0x5   :  { %v64_v6 = vld [vmem:[%s117_s0 + $0x2] ss:$8 sm:$0x7]   ;;  %s77_s28 = smov 48   ;;  %s78_s29 = smov 32   ;;  %vm43_vm6 = vcmask 392448  }
   0x6   :  { %15 = vrot.lane.b32.xlu0 %v60_v2, %s75_s20  ;;  %v65_v7 = vld [vmem:[%s117_s0 + $0x1] ss:$8 sm:$0x7]   ;;  %s79_s0 = smov 16   ;;  %vm49_vm7 = vcmask 261248  }
   0x7   :  { %29 = vrot.lane.b32.xlu1 %v62_v3, %s76_s23 }
   0xa   :  { %35 = vrot.lane.b32.xlu0 %v63_v5, %s77_s28 }
   0xb   :  { %41 = vrot.lane.b32.xlu1 %v64_v6, %s78_s29 }
   0xe   :  { %47 = vrot.lane.b32.xlu0 %v65_v7, %s79_s0 }
  0x74   :  { %v9_v8 = vpop.permute.xlu0 %8  }
  0x75   :  { %11 = vst.msk [vmem:[#allocation0] sm:$0x3] %vm10_vm1, %v9_v8   ;;  %v23_v9 = vpop.permute.xlu1 %22  }
  0x78   :  { %v16_v10 = vpop.permute.xlu0 %15  }
  0x79   :  { %18 = vst.msk [vmem:[#allocation0] sm:$0x3] %vm17_vm2, %v16_v10   ;;  %v30_v11 = vpop.permute.xlu1 %29  }
  0x7a   :  { %25 = vst.msk [vmem:[#allocation0] sm:$0x3] %vm24_vm3, %v23_v9  }
  0x7b   :  { %32 = vst.msk [vmem:[#allocation0] sm:$0x3] %vm31_vm4, %v30_v11  }
  0x7c   :  { %v36_v12 = vpop.permute.xlu0 %35  }
  0x7d   :  { %38 = vst.msk [vmem:[#allocation0] sm:$0x7] %vm37_vm5, %v36_v12   ;;  %v42_v13 = vpop.permute.xlu1 %41  }
  0x7e   :  { %44 = vst.msk [vmem:[#allocation0] sm:$0x7] %vm43_vm6, %v42_v13  }
  0x80   :  { %v48_v14 = vpop.permute.xlu0 %47  }
  0x81   :  { %50 = vst.msk [vmem:[#allocation0] sm:$0x7] %vm49_vm7, %v48_v14  }
  0x88   :  { %v55_v15 = vld [vmem:[#allocation0] sm:$0xf] }
  0x89   :  { %58 = vst [vmem:[%s118_s1] sm:$0xf] %v55_v15 }

// kernel: _lambda_.5
= control target key start
LH: loop header
LB: loop body
LE: loop exit
PB: predicated region body
PF: predicated region fallthrough
CT: control target
= control target key end

     0   :  { %v458_v4 = vmov 0.0   ;;  %vm459_vm0 = vmmov 0   ;;  %s672_s0 = inlined_call_operand.vmem [shape: f32[8,320], index: 0, kind: input, shape index: {}]   ;;  %s673_s1 = inlined_call_operand.vmem [shape: f32[320,50], index: 1, kind: input, shape index: {}]   ;;  %s674_s2 = inlined_call_operand.vmem [shape: f32[1,50], index: 2, kind: input, shape index: {}]   ;;  %s675_s3 = inlined_call_operand.vmem [shape: f32[50,10], index: 3, kind: input, shape index: {}]   ;;  %s676_s4 = inlined_call_operand.vmem [shape: f32[1,10], index: 4, kind: input, shape index: {}]   ;;  %s677_s5 = inlined_call_operand.hbm [shape: f32[8,10], index: 5, kind: output, shape index: {}]  }
   0x1   :  { %v55_v0 = vld [vmem:[%s673_s1 + $0xf8] sm:$0xff]  ;;  %v54_v2 = vld [vmem:[%s673_s1 + $0xf0] sm:$0xff]  ;;  %393 = vmatprep.subr.mxu1 %v458_v4  ;;  %v53_v5 = vld [vmem:[%s673_s1 + $0xe8] sm:$0xff]  ;;  %409 = vmatprep.mubr.msk.f32.mxu1 %vm459_vm0, %v458_v4 }
   0x2   :  { %v39_v1 = vld [vmem:[%s673_s1 + $0x78] sm:$0xff]  ;;  %341 = vmatprep.subr.mxu0 %v55_v0  ;;  %v38_v3 = vld [vmem:[%s673_s1 + $0x70] sm:$0xff]  ;;  %v37_v6 = vld [vmem:[%s673_s1 + $0x68] sm:$0xff] }
   0x3   :  { %342 = vmatpush3.msra.mxu0 %v39_v1  ;;  %v52_v7 = vld [vmem:[%s673_s1 + $0xe0] sm:$0xff]  ;;  %v51_v9 = vld [vmem:[%s673_s1 + $0xd8] sm:$0xff]  ;;  %v50_v12 = vld [vmem:[%s673_s1 + $0xd0] sm:$0xff] }
   0x4   :  { %343 = vmatprep.subr.mxu0 %v54_v2  ;;  %v36_v8 = vld [vmem:[%s673_s1 + $0x60] sm:$0xff]  ;;  %v35_v10 = vld [vmem:[%s673_s1 + $0x58] sm:$0xff]  ;;  %v62_v13 = vld [vmem:[%s673_s1 + $0x130] sm:$0xff] }
   0x5   :  { %344 = vmatpush3.msra.mxu0 %v38_v3  ;;  %v63_v11 = vld [vmem:[%s673_s1 + $0x138] sm:$0xff]  ;;  %v34_v14 = vld [vmem:[%s673_s1 + $0x50] sm:$0xff]  ;;  %v61_v15 = vld [vmem:[%s673_s1 + $0x128] sm:$0xff] }
   0x6   :  { %345 = vmatprep.subr.mxu0 %v53_v5  ;;  %394 = vmatpush3.msra.mxu1 %v63_v11  ;;  %v49_v16 = vld [vmem:[%s673_s1 + $0xc8] sm:$0xff]  ;;  %v60_v18 = vld [vmem:[%s673_s1 + $0x120] sm:$0xff]  ;;  %v59_v21 = vld [vmem:[%s673_s1 + $0x118] sm:$0xff] }
   0x7   :  { %346 = vmatpush3.msra.mxu0 %v37_v6  ;;  %395 = vmatprep.subr.mxu1 %v458_v4  ;;  %v33_v17 = vld [vmem:[%s673_s1 + $0x48] sm:$0xff]  ;;  %v48_v19 = vld [vmem:[%s673_s1 + $0xc0] sm:$0xff]  ;;  %v47_v22 = vld [vmem:[%s673_s1 + $0xb8] sm:$0xff] }
   0x8   :  { %347 = vmatprep.subr.mxu0 %v52_v7  ;;  %396 = vmatpush3.msra.mxu1 %v62_v13  ;;  %v32_v20 = vld [vmem:[%s673_s1 + $0x40] sm:$0xff] }
   0x9   :  { %348 = vmatpush3.msra.mxu0 %v36_v8  ;;  %397 = vmatprep.subr.mxu1 %v458_v4 }
   0xa   :  { %349 = vmatprep.subr.mxu0 %v51_v9  ;;  %398 = vmatpush3.msra.mxu1 %v61_v15 }
   0xb   :  { %350 = vmatpush3.msra.mxu0 %v35_v10  ;;  %399 = vmatprep.subr.mxu1 %v458_v4 }
   0xc   :  { %351 = vmatprep.subr.mxu0 %v50_v12  ;;  %400 = vmatpush3.msra.mxu1 %v60_v18 }
   0xd   :  { %352 = vmatpush3.msra.mxu0 %v34_v14 }
   0xe   :  { %353 = vmatprep.subr.mxu0 %v49_v16 }
   0xf   :  { %354 = vmatpush3.msra.mxu0 %v33_v17 }
  0x10   :  { %10 = vsyncpa [#allocation3], 0  ;;  %355 = vmatprep.subr.mxu0 %v48_v19  ;;  %v31_v23 = vld [vmem:[%s673_s1 + $0x38] sm:$0xff]  ;;  %401 = vmatprep.subr.mxu1 %v458_v4  ;;  %v22_v24 = vld [vmem:[%s672_s0 + $0x8] sm:$0xff]  ;;  %vm71_vm1 = vcmask 523264   ;;  %vm234_vm2 = vcmask 1041408  }
  0x11   :  { %356 = vmatpush3.msra.mxu0 %v32_v20  ;;  %v46_v25 = vld [vmem:[%s673_s1 + $0xb0] sm:$0xff]  ;;  %402 = vmatpush3.msra.mxu1 %v59_v21  ;;  %v45_v28 = vld [vmem:[%s673_s1 + $0xa8] sm:$0xff]  ;;  %v44_v31 = vld [vmem:[%s673_s1 + $0xa0] sm:$0xff]  ;;  %vm230_vm3 = vcmask 408576   ;;  %vm308_vm4 = vcmask 80896  }
  0x12   :  { %v58_v26 = vld [vmem:[%s673_s1 + $0x110] sm:$0xff]  ;;  %357 = vmatprep.subr.mxu0 %v47_v22  ;;  %403 = vmatprep.subr.mxu1 %v458_v4  ;;  %v57_v29 = vld [vmem:[%s673_s1 + $0x108] sm:$0xff]  ;;  %v56_v32 = vld [vmem:[%s673_s1 + $0x100] sm:$0xff] }
  0x13   :  { %v30_v27 = vld [vmem:[%s673_s1 + $0x30] sm:$0xff]  ;;  %358 = vmatpush3.msra.mxu0 %v31_v23  ;;  %139 = vmatprep.mubr.f32.mxu0 %v22_v24  ;;  %v29_v30 = vld [vmem:[%s673_s1 + $0x28] sm:$0xff]  ;;  %v28_v33 = vld [vmem:[%s673_s1 + $0x20] sm:$0xff] }
  0x14   :  { %359 = vmatprep.subr.mxu0 %v46_v25  ;;  %404 = vmatpush3.msra.mxu1 %v58_v26  ;;  %v23_v34 = vld [vmem:[%s672_s0 + $0x10] sm:$0xff]  ;;  %v43_v35 = vld [vmem:[%s673_s1 + $0x98] sm:$0xff]  ;;  %v41_v40 = vld [vmem:[%s673_s1 + $0x88] sm:$0xff] }
  0x15   :  { %360 = vmatpush3.msra.mxu0 %v30_v27  ;;  %405 = vmatprep.subr.mxu1 %v458_v4  ;;  %v27_v36 = vld [vmem:[%s673_s1 + $0x18] sm:$0xff]  ;;  %v222_v37 = vld [vmem:[%s675_s3 + $0x30] sm:$0x3]  ;;  %v25_v41 = vld [vmem:[%s673_s1 + $0x8] sm:$0xff] }
  0x16   :  { %361 = vmatprep.subr.mxu0 %v45_v28  ;;  %406 = vmatpush3.msra.mxu1 %v57_v29  ;;  %v42_v38 = vld [vmem:[%s673_s1 + $0x90] sm:$0xff]  ;;  %v40_v42 = vld [vmem:[%s673_s1 + $0x80] sm:$0xff]  ;;  %v221_v45 = vld [vmem:[%s675_s3 + $0x28] sm:$0xff] }
  0x17   :  { %362 = vmatpush3.msra.mxu0 %v29_v30  ;;  %407 = vmatprep.subr.mxu1 %v458_v4  ;;  %v26_v39 = vld [vmem:[%s673_s1 + $0x10] sm:$0xff]  ;;  %v24_v43 = vld [vmem:[%s673_s1] sm:$0xff]  ;;  %v219_v47 = vld [vmem:[%s675_s3 + $0x18] sm:$0xff] }
  0x18   :  { %363 = vmatprep.subr.mxu0 %v44_v31  ;;  %408 = vmatpush3.msra.mxu1 %v56_v32  ;;  %v21_v44 = vld [vmem:[%s672_s0] sm:$0xff]  ;;  %v218_v48 = vld [vmem:[%s675_s3 + $0x10] sm:$0xff]  ;;  %v217_v49 = vld [vmem:[%s675_s3 + $0x8] sm:$0xff] }
  0x19   :  { %364 = vmatpush3.msra.mxu0 %v28_v33  ;;  %410 = vmatmul.mubr.msk.f32.vlgmr.msra.gmra.mxu1 %vm71_vm1, %v23_v34  ;;  %v220_v46 = vld [vmem:[%s675_s3 + $0x20] sm:$0xff] }
  0x1a   :  { %365 = vmatprep.subr.mxu0 %v43_v35  ;;  %412 = vmatprep.subr.mxu1 %v458_v4  ;;  %v216_v50 = vld [vmem:[%s675_s3] sm:$0xff] }
  0x1b   :  { %366 = vmatpush3.msra.mxu0 %v27_v36  ;;  %413 = vmatpush3.msk.msra.mxu1 %vm234_vm2, %v222_v37  ;;  %v336_v55 = vld [vmem:[%s674_s2] ss:$0 sm:$0xff]  ;;  %s460_s2 = smov [#allocation2]  }
  0x1c   :  { %367 = vmatprep.subr.mxu0 %v42_v38  ;;  %414 = vmatprep.subr.mxu1 %v458_v4  ;;  %v338_v60 = vld [vmem:[%s676_s4] ss:$0 sm:$0xff]  ;;  %s328_s3 = sshll.u32 %s460_s2, 4  ;;  %s329_s3 = int_to_ptr.vmem [resolvable:$true] %s328_s3 }
  0x1d   :  { %368 = vmatpush3.msra.mxu0 %v26_v39  ;;  %426 = vmatprep.mubr.msk.f32.mxu1 %vm459_vm0, %v458_v4  ;;  %s436_s4 = scalar_lea.vmem %s329_s3, 128  ;;  %p441_p1 = scmp.lt.s32.totalorder %s329_s3, %s329_s3 }
  0x1e   :  { %369 = vmatprep.subr.mxu0 %v41_v40  ;;  %415 = vmatpush3.msra.mxu1 %v221_v45  ;;  %p437_p0 = scmp.ne.s32.totalorder %s329_s3, %s436_s4  ;;  %p442_p2 = scmp.lt.s32.totalorder %s436_s4, %s436_s4 }
  0x1f   :  { %370 = vmatpush3.msra.mxu0 %v25_v41  ;;  %416 = vmatprep.subr.mxu1 %v458_v4 }
  0x20   :  { %371 = vmatprep.subr.mxu0 %v40_v42  ;;  %417 = vmatpush3.msra.mxu1 %v220_v46  ;;  %p443_p3 = por %p442_p2, %p441_p1 }
  0x21   :  { %372 = vmatpush3.msra.mxu0 %v24_v43  ;;  %418 = vmatprep.subr.mxu1 %v458_v4 }
  0x22   :  { %140 = vmatmul.mubr.f32.vlgmr.msra.gmra.mxu0 %v21_v44  ;;  %419 = vmatpush3.msra.mxu1 %v219_v47  ;;  %p444_p4 = pnand %p443_p3, %p437_p0 }
  0x23   :  { %420 = vmatprep.subr.mxu1 %v458_v4 }
  0x24   :  { %421 = vmatpush3.msra.mxu1 %v218_v48 }
  0x25   :  { %422 = vmatprep.subr.mxu1 %v458_v4 }
  0x26   :  { %423 = vmatpush3.msra.mxu1 %v217_v49 }
  0x27   :  { %424 = vmatprep.subr.mxu1 %v458_v4 }
  0x28   :  { %425 = vmatpush3.msra.mxu1 %v216_v50 }
  0xd9   :  { %v211_v51 = vpop.f32.mrf.mxu1 }
  0xdb   :  { %v411_v52 = vpop.f32.mrf.mxu1 }
  0xe2   :  { %v373_v53 = vpop.f32.mrf.mxu0 }
  0xe4   :  { %v374_v54 = vpop.f32.mrf.mxu0 }
  0xe5   :  { %v375_v56 = vadd.f32 %v374_v54, %v373_v53 }
  0xe7   :  { %v142_v57 = vadd.f32 %v375_v56, %v336_v55 }
  0xe9   :  { %v212_v58 = vadd.f32 %v211_v51, %v142_v57 }
  0xeb   :  { %v215_v59 = vmax.f32 %v212_v58, 0.0 }
  0xed   :  { %427 = vmatmul.mubr.msk.f32.vlgmr.msra.gmra.mxu1 %vm230_vm3, %v215_v59 }
 0x1ad   :  { %v304_v61 = vpop.f32.mrf.mxu1 }
 0x1ae   :  { %v305_v62 = vadd.f32 %v338_v60, %v304_v61 }
 0x1af   :  { %v428_v63 = vpop.f32.mrf.mxu1 }
 0x1b0   :  { %v309_v0 = vsel %vm308_vm4, %v305_v62, -inf }
 0x1b1   :  { %310 = vmax.xlane.f32.xlu0 %v309_v0 }
 0x23a   :  { %v311_v1 = vpop.xlane.xlu0 %310 }
 0x23b   :  { %v312_v2 = vsub.f32 %v305_v62, %v311_v1 }
 0x23d   :  { %v313_v3 = vmul.f32 1.442695, %v312_v2 }
 0x23f   :  { %432 = vpow2.f32 %v313_v3 }
 0x24c   :  { %v433_v4 = vpop.eup %432 }
 0x24d   :  { %v315_v5 = vsel %vm308_vm4, %v433_v4, 0.0 }
 0x24e   :  { %316 = vadd.xlane.f32.xlu0 %v315_v5 }
 0x2d7   :  { %v317_v6 = vpop.xlane.xlu0 %316 }
 0x2d8   :  { %434 = vlog2.f32 %v317_v6 }
 0x2e5   :  { %v435_v7 = vpop.eup %434 }
 0x2e6   :  { %v319_v8 = vmul.f32 0.6931472, %v435_v7 }
 0x2e8   :  { %v320_v9 = vsub.f32 %v312_v2, %v319_v8 }
 0x2ea   :  { %321 = vst.msk [vmem:[#allocation2] sm:$0xff] %vm308_vm4, %v320_v9 }
 0x2eb   :  { %447 = shalt.err (!%p444_p4)
}
 0x2ec   :  { %331 = dma.vmem_to_hbm [thread:$0]  %s329_s3, 128, %s677_s5, [#allocation3]  }
 0x2ed   :  { %456 = dma.done.wait [#allocation3], 128  }
 0x2ee   :  { %457 = vsyncadd [#allocation3], 4294967168 }
 0x2ef   :  { %335 = vsyncpa [#allocation3], 1 }

</bundles_post_ra>
